<compile_context>
chip_gen: v5e
topology: v5e:2x2
jax: 0.10.0
libtpu: 0.0.40
codegen_flags: <defaults>
</compile_context>

<pallas_src>
import functools

import jax
import jax.numpy as jnp
import numpy as np
from jax.experimental import pallas as pl
from jax.experimental.pallas import tpu as pltpu


def _gaussian_weights_1d(win_size: int) -> np.ndarray:
    """Normalized 1D Gaussian; outer(g, g) equals the normalized 2D window."""
    sigma = win_size / 6.0
    r = (win_size - 1) / 2.0
    coords = np.arange(win_size, dtype=np.float64) - r
    g = np.exp(-(coords ** 2) / (2.0 * sigma ** 2))
    g = g / g.sum()
    return g.astype(np.float32)


def _sym_tap_sum(get_slice, w1, win):
    """sum_dy w1[dy] * get_slice(dy), pairing mirrored taps (w1 is symmetric)."""
    half = win // 2
    terms = []
    for dy in range(half):
        terms.append(jnp.float32(w1[dy]) * (get_slice(dy) + get_slice(win - 1 - dy)))
    if win % 2 == 1:
        terms.append(jnp.float32(w1[half]) * get_slice(half))
    acc = terms[0]
    for t in terms[1:]:
        acc = acc + t
    return acc


def _gaussian_sep_kernel(x_ref, o_ref, vp_ref, *, w1, win, H, W, pad_lo, pad_hi):
    """Separable depthwise Gaussian blur of one (CB, H, W) channel block.

    x_ref : (CB, H, W)          input block (native NCHW order, channels leading)
    o_ref : (CB, H, W)          output block
    vp_ref: (CB, H, W+win-1)    f32 scratch: vertical-pass result, zero halo columns
    """
    CB = x_ref.shape[0]
    Hi = H - (win - 1)  # number of output rows with all vertical taps in-bounds

    def xs(row_lo, rows, dy):
        # input rows feeding output rows [row_lo, row_lo+rows) under tap dy
        r0 = row_lo + dy - pad_lo
        return x_ref[:, r0:r0 + rows, :].astype(jnp.float32)

    # --- zero the W-halo columns every step (robust under parallel grid sharding) ---
    if pad_lo:
        vp_ref[:, :, :pad_lo] = jnp.zeros((CB, H, pad_lo), jnp.float32)
    if pad_hi:
        vp_ref[:, :, pad_lo + W:] = jnp.zeros((CB, H, pad_hi), jnp.float32)

    # --- vertical 1-D pass: sublane-axis slices of the input, no padded copy ---
    if Hi > 0:
        v_int = _sym_tap_sum(lambda dy: xs(pad_lo, Hi, dy), w1, win)
        vp_ref[:, pad_lo:pad_lo + Hi, pad_lo:pad_lo + W] = v_int
        boundary_rows = list(range(pad_lo)) + list(range(H - pad_hi, H))
    else:
        boundary_rows = list(range(H))

    # Boundary rows: shortened tap sums emulate zero padding along H.
    for y in boundary_rows:
        dy_lo = max(0, pad_lo - y)
        dy_hi = min(win, H + pad_lo - y)
        acc = None
        for dy in range(dy_lo, dy_hi):
            t = jnp.float32(w1[dy]) * xs(y, 1, dy)
            acc = t if acc is None else acc + t
        vp_ref[:, y:y + 1, pad_lo:pad_lo + W] = acc

    # --- horizontal 1-D pass: lane-axis slices of the zero-padded scratch ---
    out = _sym_tap_sum(lambda dx: vp_ref[:, :, dx:dx + W], w1, win)
    o_ref[...] = out.astype(o_ref.dtype)


def _vmem_capacity_bytes() -> int:
    try:
        info = pltpu.get_tpu_info()
        cap = int(getattr(info, "vmem_capacity_bytes", 0) or 0)
        if cap > 0:
            return cap
    except Exception:
        pass
    return 64 << 20  # conservative default (v7x physical VMEM per TensorCore)


@functools.partial(jax.jit, static_argnames=("win_size",))
def gaussian_filter(x: jax.Array, win_size: int) -> jax.Array:
    """Depthwise Gaussian blur of an NCHW tensor; same-size output (zero padding)."""
    N, C, H, W = x.shape
    NC = N * C
    pad_lo = (win_size - 1) // 2
    pad_hi = win_size - 1 - pad_lo        # asymmetric for even windows
    Wp = W + win_size - 1
    w1 = _gaussian_weights_1d(win_size)

    # Native layout: merge leading dims only (free), no HBM transpose traffic.
    x_flat = x.reshape(NC, H, W)

    # --- channels per grid step, sized from the actual VMEM capacity ---
    # Live per-channel f32 footprint: double-buffered in + out (4 slabs), the
    # W-padded scratch, and ~4 materialized temporaries  =>  ~9 (H, Wp) f32 slabs.
    vmem_cap = _vmem_capacity_bytes()
    vmem_limit = max(32 << 20, min(vmem_cap - (16 << 20), 96 << 20))
    budget = int(vmem_limit * 0.85)
    per_channel = 9 * H * Wp * 4
    CB = max(1, min(NC, budget // per_channel))
    # TODO(synk): for very large H*W even CB=1 can exceed VMEM; spatial tiling over H
    #             (halo rows via manual DMA) would be needed there and would also keep
    #             both v7x TensorCores busy for small channel counts.

    kernel = functools.partial(
        _gaussian_sep_kernel, w1=w1, win=win_size, H=H, W=W,
        pad_lo=pad_lo, pad_hi=pad_hi)

    out_flat = pl.pallas_call(
        kernel,
        out_shape=jax.ShapeDtypeStruct((NC, H, W), x.dtype),
        grid_spec=pltpu.PrefetchScalarGridSpec(
            num_scalar_prefetch=0,
            grid=(pl.cdiv(NC, CB),),
            in_specs=[pl.BlockSpec((CB, H, W), lambda i: (i, 0, 0))],
            out_specs=pl.BlockSpec((CB, H, W), lambda i: (i, 0, 0)),
            scratch_shapes=[
                pltpu.VMEM((CB, H, Wp), jnp.float32),   # W-padded vertical-pass result
            ],
        ),
        compiler_params=pltpu.CompilerParams(
            dimension_semantics=("parallel",),          # channel blocks split across TCs
            vmem_limit_bytes=int(vmem_limit),
        ),
    )(x_flat)

    return out_flat.reshape(N, C, H, W)


def _reference_gaussian_filter(x: jax.Array, win_size: int) -> jax.Array:
    """Pure-JAX reference (lax depthwise conv) for correctness checking."""
    N, C, H, W = x.shape
    pad_lo = (win_size - 1) // 2
    pad_hi = win_size - 1 - pad_lo
    g = _gaussian_weights_1d(win_size)
    w2 = jnp.asarray(np.outer(g, g))
    kern = jnp.broadcast_to(w2[None, None], (C, 1, win_size, win_size))
    return jax.lax.conv_general_dilated(
        x.astype(jnp.float32),
        kern,
        window_strides=(1, 1),
        padding=((pad_lo, pad_hi), (pad_lo, pad_hi)),
        feature_group_count=C,
        dimension_numbers=("NCHW", "OIHW", "NCHW"),
    ).astype(x.dtype)


if __name__ == "__main__":
    key = jax.random.PRNGKey(0)
    N, C, H, W = 2, 4, 16, 16
    win_size = 5

    x = jax.random.normal(key, (N, C, H, W), dtype=jnp.float32)

    out = gaussian_filter(x, win_size)
    out = jax.block_until_ready(out)

    ref = _reference_gaussian_filter(x, win_size)
    np.testing.assert_allclose(np.asarray(out), np.asarray(ref), rtol=1e-5, atol=1e-5)

    print("KERNEL_OK")
</pallas_src>

<mosaic_0001>
module attributes {stable_mosaic.version = 11 : i64} {
  func.func @_gaussian_sep_kernel(%arg0: i32, %arg1: memref<8x16x16xf32, #tpu.memory_space<vmem>>, %arg2: memref<8x16x16xf32, #tpu.memory_space<vmem>>, %arg3: memref<8x16x20xf32, #tpu.memory_space<vmem>>) attributes {dimension_semantics = [#tpu.dimension_semantics<parallel>], iteration_bounds = array<i64: 1>, scalar_prefetch = 0 : i64, scratch_operands = 1 : i64, tpu.core_type = #tpu.core_type<tc>, window_params = [{transform_indices = @transform_0, window_bounds = array<i64: 8, 16, 16>}, {transform_indices = @transform_1, window_bounds = array<i64: 8, 16, 16>}]} {
    %cst = arith.constant 0.000000e+00 : f32
    %0 = vector.broadcast %cst : f32 to vector<8x16x2xf32>
    %c0 = arith.constant 0 : index
    %c0_0 = arith.constant 0 : index
    %c0_1 = arith.constant 0 : index
    %1 = vector.load %arg3[%c0, %c0_0, %c0_1] : memref<8x16x20xf32, #tpu.memory_space<vmem>>, vector<8x16x2xf32>
    tpu.vector_store %arg3[%c0, %c0_0, %c0_1], %0 {strides = array<i32>} : memref<8x16x20xf32, #tpu.memory_space<vmem>>, vector<8x16x2xf32>,
    %cst_2 = arith.constant 0.000000e+00 : f32
    %2 = vector.broadcast %cst_2 : f32 to vector<8x16x2xf32>
    %c0_3 = arith.constant 0 : index
    %c0_4 = arith.constant 0 : index
    %c18 = arith.constant 18 : index
    %3 = vector.load %arg3[%c0_3, %c0_4, %c18] : memref<8x16x20xf32, #tpu.memory_space<vmem>>, vector<8x16x2xf32>
    tpu.vector_store %arg3[%c0_3, %c0_4, %c18], %2 {strides = array<i32>} : memref<8x16x20xf32, #tpu.memory_space<vmem>>, vector<8x16x2xf32>,
    %c0_5 = arith.constant 0 : index
    %c0_6 = arith.constant 0 : index
    %c0_7 = arith.constant 0 : index
    %4 = vector.load %arg1[%c0_5, %c0_6, %c0_7] : memref<8x16x16xf32, #tpu.memory_space<vmem>>, vector<8x12x16xf32>
    %c0_8 = arith.constant 0 : index
    %c4 = arith.constant 4 : index
    %c0_9 = arith.constant 0 : index
    %5 = vector.load %arg1[%c0_8, %c4, %c0_9] : memref<8x16x16xf32, #tpu.memory_space<vmem>>, vector<8x12x16xf32>
    %6 = arith.addf %4, %5 : vector<8x12x16xf32>
    %cst_10 = arith.constant 0.0269131567 : f32
    %7 = vector.broadcast %cst_10 : f32 to vector<8x12x16xf32>
    %8 = arith.mulf %7, %6 : vector<8x12x16xf32>
    %c0_11 = arith.constant 0 : index
    %c1 = arith.constant 1 : index
    %c0_12 = arith.constant 0 : index
    %9 = vector.load %arg1[%c0_11, %c1, %c0_12] : memref<8x16x16xf32, #tpu.memory_space<vmem>>, vector<8x12x16xf32>
    %c0_13 = arith.constant 0 : index
    %c3 = arith.constant 3 : index
    %c0_14 = arith.constant 0 : index
    %10 = vector.load %arg1[%c0_13, %c3, %c0_14] : memref<8x16x16xf32, #tpu.memory_space<vmem>>, vector<8x12x16xf32>
    %11 = arith.addf %9, %10 : vector<8x12x16xf32>
    %cst_15 = arith.constant 0.233367682 : f32
    %12 = vector.broadcast %cst_15 : f32 to vector<8x12x16xf32>
    %13 = arith.mulf %12, %11 : vector<8x12x16xf32>
    %c0_16 = arith.constant 0 : index
    %c2 = arith.constant 2 : index
    %c0_17 = arith.constant 0 : index
    %14 = vector.load %arg1[%c0_16, %c2, %c0_17] : memref<8x16x16xf32, #tpu.memory_space<vmem>>, vector<8x12x16xf32>
    %cst_18 = arith.constant 0.479438305 : f32
    %15 = vector.broadcast %cst_18 : f32 to vector<8x12x16xf32>
    %16 = arith.mulf %15, %14 : vector<8x12x16xf32>
    %17 = arith.addf %8, %13 : vector<8x12x16xf32>
    %18 = arith.addf %17, %16 : vector<8x12x16xf32>
    %c0_19 = arith.constant 0 : index
    %c2_20 = arith.constant 2 : index
    %c2_21 = arith.constant 2 : index
    %19 = vector.load %arg3[%c0_19, %c2_20, %c2_21] : memref<8x16x20xf32, #tpu.memory_space<vmem>>, vector<8x12x16xf32>
    tpu.vector_store %arg3[%c0_19, %c2_20, %c2_21], %18 {strides = array<i32>} : memref<8x16x20xf32, #tpu.memory_space<vmem>>, vector<8x12x16xf32>,
    %c0_22 = arith.constant 0 : index
    %c0_23 = arith.constant 0 : index
    %c0_24 = arith.constant 0 : index
    %20 = vector.load %arg1[%c0_22, %c0_23, %c0_24] : memref<8x16x16xf32, #tpu.memory_space<vmem>>, vector<8x1x16xf32>
    %cst_25 = arith.constant 0.479438305 : f32
    %21 = vector.broadcast %cst_25 : f32 to vector<8x1x16xf32>
    %22 = arith.mulf %21, %20 : vector<8x1x16xf32>
    %c0_26 = arith.constant 0 : index
    %c1_27 = arith.constant 1 : index
    %c0_28 = arith.constant 0 : index
    %23 = vector.load %arg1[%c0_26, %c1_27, %c0_28] : memref<8x16x16xf32, #tpu.memory_space<vmem>>, vector<8x1x16xf32>
    %cst_29 = arith.constant 0.233367682 : f32
    %24 = vector.broadcast %cst_29 : f32 to vector<8x1x16xf32>
    %25 = arith.mulf %24, %23 : vector<8x1x16xf32>
    %26 = arith.addf %22, %25 : vector<8x1x16xf32>
    %c0_30 = arith.constant 0 : index
    %c2_31 = arith.constant 2 : index
    %c0_32 = arith.constant 0 : index
    %27 = vector.load %arg1[%c0_30, %c2_31, %c0_32] : memref<8x16x16xf32, #tpu.memory_space<vmem>>, vector<8x1x16xf32>
    %cst_33 = arith.constant 0.0269131567 : f32
    %28 = vector.broadcast %cst_33 : f32 to vector<8x1x16xf32>
    %29 = arith.mulf %28, %27 : vector<8x1x16xf32>
    %30 = arith.addf %26, %29 : vector<8x1x16xf32>
    %c0_34 = arith.constant 0 : index
    %c0_35 = arith.constant 0 : index
    %c2_36 = arith.constant 2 : index
    %31 = vector.load %arg3[%c0_34, %c0_35, %c2_36] : memref<8x16x20xf32, #tpu.memory_space<vmem>>, vector<8x1x16xf32>
    tpu.vector_store %arg3[%c0_34, %c0_35, %c2_36], %30 {strides = array<i32>} : memref<8x16x20xf32, #tpu.memory_space<vmem>>, vector<8x1x16xf32>,
    %c0_37 = arith.constant 0 : index
    %c0_38 = arith.constant 0 : index
    %c0_39 = arith.constant 0 : index
    %32 = vector.load %arg1[%c0_37, %c0_38, %c0_39] : memref<8x16x16xf32, #tpu.memory_space<vmem>>, vector<8x1x16xf32>
    %cst_40 = arith.constant 0.233367682 : f32
    %33 = vector.broadcast %cst_40 : f32 to vector<8x1x16xf32>
    %34 = arith.mulf %33, %32 : vector<8x1x16xf32>
    %c0_41 = arith.constant 0 : index
    %c1_42 = arith.constant 1 : index
    %c0_43 = arith.constant 0 : index
    %35 = vector.load %arg1[%c0_41, %c1_42, %c0_43] : memref<8x16x16xf32, #tpu.memory_space<vmem>>, vector<8x1x16xf32>
    %cst_44 = arith.constant 0.479438305 : f32
    %36 = vector.broadcast %cst_44 : f32 to vector<8x1x16xf32>
    %37 = arith.mulf %36, %35 : vector<8x1x16xf32>
    %38 = arith.addf %34, %37 : vector<8x1x16xf32>
    %c0_45 = arith.constant 0 : index
    %c2_46 = arith.constant 2 : index
    %c0_47 = arith.constant 0 : index
    %39 = vector.load %arg1[%c0_45, %c2_46, %c0_47] : memref<8x16x16xf32, #tpu.memory_space<vmem>>, vector<8x1x16xf32>
    %cst_48 = arith.constant 0.233367682 : f32
    %40 = vector.broadcast %cst_48 : f32 to vector<8x1x16xf32>
    %41 = arith.mulf %40, %39 : vector<8x1x16xf32>
    %42 = arith.addf %38, %41 : vector<8x1x16xf32>
    %c0_49 = arith.constant 0 : index
    %c3_50 = arith.constant 3 : index
    %c0_51 = arith.constant 0 : index
    %43 = vector.load %arg1[%c0_49, %c3_50, %c0_51] : memref<8x16x16xf32, #tpu.memory_space<vmem>>, vector<8x1x16xf32>
    %cst_52 = arith.constant 0.0269131567 : f32
    %44 = vector.broadcast %cst_52 : f32 to vector<8x1x16xf32>
    %45 = arith.mulf %44, %43 : vector<8x1x16xf32>
    %46 = arith.addf %42, %45 : vector<8x1x16xf32>
    %c0_53 = arith.constant 0 : index
    %c1_54 = arith.constant 1 : index
    %c2_55 = arith.constant 2 : index
    %47 = vector.load %arg3[%c0_53, %c1_54, %c2_55] : memref<8x16x20xf32, #tpu.memory_space<vmem>>, vector<8x1x16xf32>
    tpu.vector_store %arg3[%c0_53, %c1_54, %c2_55], %46 {strides = array<i32>} : memref<8x16x20xf32, #tpu.memory_space<vmem>>, vector<8x1x16xf32>,
    %c0_56 = arith.constant 0 : index
    %c12 = arith.constant 12 : index
    %c0_57 = arith.constant 0 : index
    %48 = vector.load %arg1[%c0_56, %c12, %c0_57] : memref<8x16x16xf32, #tpu.memory_space<vmem>>, vector<8x1x16xf32>
    %cst_58 = arith.constant 0.0269131567 : f32
    %49 = vector.broadcast %cst_58 : f32 to vector<8x1x16xf32>
    %50 = arith.mulf %49, %48 : vector<8x1x16xf32>
    %c0_59 = arith.constant 0 : index
    %c13 = arith.constant 13 : index
    %c0_60 = arith.constant 0 : index
    %51 = vector.load %arg1[%c0_59, %c13, %c0_60] : memref<8x16x16xf32, #tpu.memory_space<vmem>>, vector<8x1x16xf32>
    %cst_61 = arith.constant 0.233367682 : f32
    %52 = vector.broadcast %cst_61 : f32 to vector<8x1x16xf32>
    %53 = arith.mulf %52, %51 : vector<8x1x16xf32>
    %54 = arith.addf %50, %53 : vector<8x1x16xf32>
    %c0_62 = arith.constant 0 : index
    %c14 = arith.constant 14 : index
    %c0_63 = arith.constant 0 : index
    %55 = vector.load %arg1[%c0_62, %c14, %c0_63] : memref<8x16x16xf32, #tpu.memory_space<vmem>>, vector<8x1x16xf32>
    %cst_64 = arith.constant 0.479438305 : f32
    %56 = vector.broadcast %cst_64 : f32 to vector<8x1x16xf32>
    %57 = arith.mulf %56, %55 : vector<8x1x16xf32>
    %58 = arith.addf %54, %57 : vector<8x1x16xf32>
    %c0_65 = arith.constant 0 : index
    %c15 = arith.constant 15 : index
    %c0_66 = arith.constant 0 : index
    %59 = vector.load %arg1[%c0_65, %c15, %c0_66] : memref<8x16x16xf32, #tpu.memory_space<vmem>>, vector<8x1x16xf32>
    %cst_67 = arith.constant 0.233367682 : f32
    %60 = vector.broadcast %cst_67 : f32 to vector<8x1x16xf32>
    %61 = arith.mulf %60, %59 : vector<8x1x16xf32>
    %62 = arith.addf %58, %61 : vector<8x1x16xf32>
    %c0_68 = arith.constant 0 : index
    %c14_69 = arith.constant 14 : index
    %c2_70 = arith.constant 2 : index
    %63 = vector.load %arg3[%c0_68, %c14_69, %c2_70] : memref<8x16x20xf32, #tpu.memory_space<vmem>>, vector<8x1x16xf32>
    tpu.vector_store %arg3[%c0_68, %c14_69, %c2_70], %62 {strides = array<i32>} : memref<8x16x20xf32, #tpu.memory_space<vmem>>, vector<8x1x16xf32>,
    %c0_71 = arith.constant 0 : index
    %c13_72 = arith.constant 13 : index
    %c0_73 = arith.constant 0 : index
    %64 = vector.load %arg1[%c0_71, %c13_72, %c0_73] : memref<8x16x16xf32, #tpu.memory_space<vmem>>, vector<8x1x16xf32>
    %cst_74 = arith.constant 0.0269131567 : f32
    %65 = vector.broadcast %cst_74 : f32 to vector<8x1x16xf32>
    %66 = arith.mulf %65, %64 : vector<8x1x16xf32>
    %c0_75 = arith.constant 0 : index
    %c14_76 = arith.constant 14 : index
    %c0_77 = arith.constant 0 : index
    %67 = vector.load %arg1[%c0_75, %c14_76, %c0_77] : memref<8x16x16xf32, #tpu.memory_space<vmem>>, vector<8x1x16xf32>
    %cst_78 = arith.constant 0.233367682 : f32
    %68 = vector.broadcast %cst_78 : f32 to vector<8x1x16xf32>
    %69 = arith.mulf %68, %67 : vector<8x1x16xf32>
    %70 = arith.addf %66, %69 : vector<8x1x16xf32>
    %c0_79 = arith.constant 0 : index
    %c15_80 = arith.constant 15 : index
    %c0_81 = arith.constant 0 : index
    %71 = vector.load %arg1[%c0_79, %c15_80, %c0_81] : memref<8x16x16xf32, #tpu.memory_space<vmem>>, vector<8x1x16xf32>
    %cst_82 = arith.constant 0.479438305 : f32
    %72 = vector.broadcast %cst_82 : f32 to vector<8x1x16xf32>
    %73 = arith.mulf %72, %71 : vector<8x1x16xf32>
    %74 = arith.addf %70, %73 : vector<8x1x16xf32>
    %c0_83 = arith.constant 0 : index
    %c15_84 = arith.constant 15 : index
    %c2_85 = arith.constant 2 : index
    %75 = vector.load %arg3[%c0_83, %c15_84, %c2_85] : memref<8x16x20xf32, #tpu.memory_space<vmem>>, vector<8x1x16xf32>
    tpu.vector_store %arg3[%c0_83, %c15_84, %c2_85], %74 {strides = array<i32>} : memref<8x16x20xf32, #tpu.memory_space<vmem>>, vector<8x1x16xf32>,
    %c0_86 = arith.constant 0 : index
    %c0_87 = arith.constant 0 : index
    %c0_88 = arith.constant 0 : index
    %76 = vector.load %arg3[%c0_86, %c0_87, %c0_88] : memref<8x16x20xf32, #tpu.memory_space<vmem>>, vector<8x16x16xf32>
    %c0_89 = arith.constant 0 : index
    %c0_90 = arith.constant 0 : index
    %c4_91 = arith.constant 4 : index
    %77 = vector.load %arg3[%c0_89, %c0_90, %c4_91] : memref<8x16x20xf32, #tpu.memory_space<vmem>>, vector<8x16x16xf32>
    %78 = arith.addf %76, %77 : vector<8x16x16xf32>
    %cst_92 = arith.constant 0.0269131567 : f32
    %79 = vector.broadcast %cst_92 : f32 to vector<8x16x16xf32>
    %80 = arith.mulf %79, %78 : vector<8x16x16xf32>
    %c0_93 = arith.constant 0 : index
    %c0_94 = arith.constant 0 : index
    %c1_95 = arith.constant 1 : index
    %81 = vector.load %arg3[%c0_93, %c0_94, %c1_95] : memref<8x16x20xf32, #tpu.memory_space<vmem>>, vector<8x16x16xf32>
    %c0_96 = arith.constant 0 : index
    %c0_97 = arith.constant 0 : index
    %c3_98 = arith.constant 3 : index
    %82 = vector.load %arg3[%c0_96, %c0_97, %c3_98] : memref<8x16x20xf32, #tpu.memory_space<vmem>>, vector<8x16x16xf32>
    %83 = arith.addf %81, %82 : vector<8x16x16xf32>
    %cst_99 = arith.constant 0.233367682 : f32
    %84 = vector.broadcast %cst_99 : f32 to vector<8x16x16xf32>
    %85 = arith.mulf %84, %83 : vector<8x16x16xf32>
    %c0_100 = arith.constant 0 : index
    %c0_101 = arith.constant 0 : index
    %c2_102 = arith.constant 2 : index
    %86 = vector.load %arg3[%c0_100, %c0_101, %c2_102] : memref<8x16x20xf32, #tpu.memory_space<vmem>>, vector<8x16x16xf32>
    %cst_103 = arith.constant 0.479438305 : f32
    %87 = vector.broadcast %cst_103 : f32 to vector<8x16x16xf32>
    %88 = arith.mulf %87, %86 : vector<8x16x16xf32>
    %89 = arith.addf %80, %85 : vector<8x16x16xf32>
    %90 = arith.addf %89, %88 : vector<8x16x16xf32>
    %c0_104 = arith.constant 0 : index
    %c0_105 = arith.constant 0 : index
    %c0_106 = arith.constant 0 : index
    %91 = vector.load %arg2[%c0_104, %c0_105, %c0_106] : memref<8x16x16xf32, #tpu.memory_space<vmem>>, vector<8x16x16xf32>
    tpu.vector_store %arg2[%c0_104, %c0_105, %c0_106], %90 {strides = array<i32>} : memref<8x16x16xf32, #tpu.memory_space<vmem>>, vector<8x16x16xf32>,
    return
  }
  func.func @transform_0(%arg0: i32) -> (i32, i32, i32) {
    %c0_i32 = arith.constant 0 : i32
    %c0_i32_0 = arith.constant 0 : i32
    %c0_i32_1 = arith.constant 0 : i32
    return %arg0, %c0_i32, %c0_i32_0 : i32, i32, i32
  }
  func.func @transform_1(%arg0: i32) -> (i32, i32, i32) {
    %c0_i32 = arith.constant 0 : i32
    %c0_i32_0 = arith.constant 0 : i32
    %c0_i32_1 = arith.constant 0 : i32
    return %arg0, %c0_i32, %c0_i32_0 : i32, i32, i32
  }
}

</mosaic_0001>

<bundles_post_ra>
// kernel: gaussian_filter.1
= control target key start
LH: loop header
LB: loop body
LE: loop exit
PB: predicated region body
PF: predicated region fallthrough
CT: control target
= control target key end

     0   :  { %6 = vsyncpa [#allocation4], 0  ;;  %s1703_s0 = inlined_call_operand.hbm [shape: f32[8,16,16], index: 0, kind: input, shape index: {}]   ;;  %s1704_s1 = inlined_call_operand.hbm [shape: f32[8,16,16], index: 1, kind: output, shape index: {}]  }
   0x1   :  { %7 = vsyncpa [#allocation5], 0  ;;  %s12_s8 = sshll.u32 %s1703_s0, 4  ;;  %s1263_s9 = smov [#allocation3]   ;;  %s13_s8 = int_to_ptr.hbm [resolvable:$true] %s12_s8 }
   0x2   :  { %s14_s10 = sshll.u32 %s1263_s9, 4  ;;  %s1264_s11 = smov 128   ;;  %s15_s10 = int_to_ptr.vmem [resolvable:$true] %s14_s10 }
   0x3   :  { %s1265_s12 = smov 8  }
   0x4   :  { %20 = dma.hbm_to_vmem [thread:$0]  %s13_s8, 2048, %s15_s10, [#allocation4], %s1264_s11, %s1264_s11, %s1265_s12  }
   0x5   :  { %1259 = dma.done.wait [#allocation4], 2048  }
   0x6   :  { %1260 = vsyncadd [#allocation4], 4294965248  ;;  %v61_v0 = vld [vmem:[#allocation3 + $0x10] sm:$0xff]  ;;  %v59_v6 = vld [vmem:[#allocation3] sm:$0xff]  ;;  %s1266_s0 = smov 2   ;;  %vm25_vm0 = vcmask 15360  }
   0x7   :  { %v77_v1 = vld [vmem:[#allocation3 + $0x14] sm:$0xff]  ;;  %v75_v9 = vld [vmem:[#allocation3 + $0x4] sm:$0xff]  ;;  %v78_v33 = vld [vmem:[#allocation3 + $0x1c] sm:$0xf]  ;;  %vm42_vm1 = vcmask 162960   ;;  %vm315_vm2 = vcmask 146448  }
   0x8   :  { %v125_v2 = vld [vmem:[#allocation3 + $0x11] sm:$0xff]  ;;  %v93_v3 = vadd.f32 %v77_v1, %v61_v0  ;;  %v123_v10 = vld [vmem:[#allocation3 + $0x1] sm:$0xff]  ;;  %v91_v13 = vadd.f32 %v75_v9, %v59_v6  ;;  %v126_v34 = vld [vmem:[#allocation3 + $0x19] sm:$0xf]  ;;  %vm317_vm3 = vcmask 142352   ;;  %vm429_vm4 = vcmask 139280  }
   0x9   :  { %v141_v4 = vld [vmem:[#allocation3 + $0x13] sm:$0xff]  ;;  %v139_v11 = vld [vmem:[#allocation3 + $0x3] sm:$0xff]  ;;  %v142_v37 = vld [vmem:[#allocation3 + $0x1b] sm:$0xf]  ;;  %s1268_s13 = smov 124   ;;  %s1269_s14 = smov 126  }
   0xa   :  { %v189_v5 = vld [vmem:[#allocation3 + $0x12] sm:$0xff]  ;;  %v157_v7 = vadd.f32 %v141_v4, %v125_v2  ;;  %v109_v12 = vmul.f32 0.026913157, %v93_v3  ;;  %v155_v14 = vadd.f32 %v139_v11, %v123_v10  ;;  %v187_v15 = vld [vmem:[#allocation3 + $0x2] sm:$0xff]  ;;  %v107_v23 = vmul.f32 0.026913157, %v91_v13 }
   0xb   :  { %v205_v8 = vmul.f32 0.4794383, %v189_v5  ;;  %v63_v16 = vld [vmem:[#allocation3 + $0x20] sm:$0xff]  ;;  %v203_v19 = vmul.f32 0.4794383, %v187_v15  ;;  %v158_v42 = vadd.f32 %v142_v37, %v126_v34  ;;  %v65_v58 = vld [vmem:[#allocation3 + $0x30] sm:$0xff] }
   0xc   :  { %v79_v17 = vld [vmem:[#allocation3 + $0x24] sm:$0xff]  ;;  %v173_v18 = vmul.f32 0.23336768, %v157_v7  ;;  %v171_v24 = vmul.f32 0.23336768, %v155_v14  ;;  %v81_v13 = vld [vmem:[#allocation3 + $0x34] sm:$0xff] }
   0xd   :  { %v95_v20 = vadd.f32 %v79_v17, %v63_v16  ;;  %v127_v21 = vld [vmem:[#allocation3 + $0x21] sm:$0xff]  ;;  %v62_v30 = vld [vmem:[#allocation3 + $0x18] sm:$0xf]  ;;  %v76_v44 = vld [vmem:[#allocation3 + $0xc] sm:$0xf]  ;;  %s1270_s15 = smov 127  }
   0xe   :  { %v143_v22 = vld [vmem:[#allocation3 + $0x23] sm:$0xff]  ;;  %v221_v27 = vadd.f32 %v173_v18, %v109_v12  ;;  %v219_v31 = vadd.f32 %v171_v24, %v107_v23  ;;  %v94_v36 = vadd.f32 %v78_v33, %v62_v30  ;;  %v190_v38 = vld [vmem:[#allocation3 + $0x1a] sm:$0xf]  ;;  %v140_v48 = vld [vmem:[#allocation3 + $0xb] sm:$0xf]  ;;  %v97_v18 = vadd.f32 %v81_v13, %v65_v58  ;;  %s1271_s16 = smov [#allocation6]  }
   0xf   :  { %v159_v25 = vadd.f32 %v143_v22, %v127_v21  ;;  %v191_v26 = vld [vmem:[#allocation3 + $0x22] sm:$0xff]  ;;  %v111_v28 = vmul.f32 0.026913157, %v95_v20  ;;  %v206_v43 = vmul.f32 0.4794383, %v190_v38  ;;  %v129_v14 = vld [vmem:[#allocation3 + $0x31] sm:$0xff] }
  0x10   :  { %v207_v29 = vmul.f32 0.4794383, %v191_v26  ;;  %v237_v35 = vadd.f32 %v221_v27, %v205_v8  ;;  %v60_v39 = vld [vmem:[#allocation3 + $0x8] sm:$0xf]  ;;  %v235_v40 = vadd.f32 %v219_v31, %v203_v19  ;;  %v110_v46 = vmul.f32 0.026913157, %v94_v36 }
  0x11   :  { %v175_v32 = vmul.f32 0.23336768, %v159_v25  ;;  %v124_v45 = vld [vmem:[#allocation3 + $0x9] sm:$0xf]  ;;  %v92_v47 = vadd.f32 %v76_v44, %v60_v39  ;;  %v174_v51 = vmul.f32 0.23336768, %v158_v42 }
  0x12   :  { %271 = vrot.lane.b32.xlu1 %v237_v35, %s1266_s0  ;;  %v188_v49 = vld [vmem:[#allocation3 + $0xa] sm:$0xf]  ;;  %267 = vrot.lane.b32.xlu0 %v235_v40, %s1266_s0  ;;  %v156_v52 = vadd.f32 %v140_v48, %v124_v45  ;;  %v66_v2 = vld [vmem:[#allocation3 + $0x38] sm:$0xf]  ;;  %v82_v3 = vld [vmem:[#allocation3 + $0x3c] sm:$0xf] }
  0x13   :  { %v223_v41 = vadd.f32 %v175_v32, %v111_v28  ;;  %v204_v53 = vmul.f32 0.4794383, %v188_v49  ;;  %v64_v54 = vld [vmem:[#allocation3 + $0x28] sm:$0xf]  ;;  %v108_v55 = vmul.f32 0.026913157, %v92_v47  ;;  %v222_v59 = vadd.f32 %v174_v51, %v110_v46 }
  0x14   :  { %v80_v56 = vld [vmem:[#allocation3 + $0x2c] sm:$0xf]  ;;  %v172_v60 = vmul.f32 0.23336768, %v156_v52  ;;  %v98_v7 = vadd.f32 %v82_v3, %v66_v2  ;;  %v130_v8 = vld [vmem:[#allocation3 + $0x39] sm:$0xf] }
  0x15   :  { %v239_v50 = vadd.f32 %v223_v41, %v207_v29  ;;  %v128_v57 = vld [vmem:[#allocation3 + $0x29] sm:$0xf]  ;;  %v96_v61 = vadd.f32 %v80_v56, %v64_v54  ;;  %v238_v4 = vadd.f32 %v222_v59, %v206_v43  ;;  %v146_v9 = vld [vmem:[#allocation3 + $0x3b] sm:$0xf]  ;;  %v145_v19 = vld [vmem:[#allocation3 + $0x33] sm:$0xff]  ;;  %vm1166_vm5 = vcmask 130048  }
  0x16   :  { %v144_v62 = vld [vmem:[#allocation3 + $0x2b] sm:$0xf]  ;;  %v220_v5 = vadd.f32 %v172_v60, %v108_v55  ;;  %v162_v11 = vadd.f32 %v146_v9, %v130_v8  ;;  %v194_v12 = vld [vmem:[#allocation3 + $0x3a] sm:$0xf]  ;;  %v114_v16 = vmul.f32 0.026913157, %v98_v7  ;;  %v161_v23 = vadd.f32 %v145_v19, %v129_v14 }
  0x17   :  { %275 = vrot.lane.b32.xlu2 %v239_v50, %s1266_s0  ;;  %v192_v63 = vld [vmem:[#allocation3 + $0x2a] sm:$0xf]  ;;  %v160_v0 = vadd.f32 %v144_v62, %v128_v57  ;;  %v112_v6 = vmul.f32 0.026913157, %v96_v61  ;;  %v210_v17 = vmul.f32 0.4794383, %v194_v12 }
  0x18   :  { %v208_v1 = vmul.f32 0.4794383, %v192_v63  ;;  %v236_v15 = vadd.f32 %v220_v5, %v204_v53  ;;  %v193_v20 = vld [vmem:[#allocation3 + $0x32] sm:$0xff]  ;;  %v178_v22 = vmul.f32 0.23336768, %v162_v11  ;;  %v67_v25 = vld [vmem:[#allocation3 + $0x40] sm:$0xff] }
  0x19   :  { %v176_v10 = vmul.f32 0.23336768, %v160_v0  ;;  %v209_v24 = vmul.f32 0.4794383, %v193_v20  ;;  %v83_v26 = vld [vmem:[#allocation3 + $0x44] sm:$0xff]  ;;  %v69_v36 = vld [vmem:[#allocation3 + $0x50] sm:$0xff] }
  0x1a   :  { %273 = vrot.lane.b32.xlu1 %v238_v4, %s1266_s0  ;;  %269 = vrot.lane.b32.xlu0 %v236_v15, %s1266_s0  ;;  %v113_v27 = vmul.f32 0.026913157, %v97_v18  ;;  %v99_v28 = vadd.f32 %v83_v26, %v67_v25  ;;  %v131_v29 = vld [vmem:[#allocation3 + $0x41] sm:$0xff]  ;;  %v226_v33 = vadd.f32 %v178_v22, %v114_v16  ;;  %v177_v34 = vmul.f32 0.23336768, %v161_v23  ;;  %v85_v37 = vld [vmem:[#allocation3 + $0x54] sm:$0xff] }
  0x1b   :  { %v224_v21 = vadd.f32 %v176_v10, %v112_v6  ;;  %v147_v30 = vld [vmem:[#allocation3 + $0x43] sm:$0xff]  ;;  %v133_v38 = vld [vmem:[#allocation3 + $0x51] sm:$0xff]  ;;  %v101_v41 = vadd.f32 %v85_v37, %v69_v36  ;;  %v84_v49 = vld [vmem:[#allocation3 + $0x4c] sm:$0xf]  ;;  %s1187_s17 = sshll.u32 %s1271_s16, 4  ;;  %s1189_s20 = sshll.u32 %s1704_s1, 4  ;;  %s1188_s17 = int_to_ptr.vmem [resolvable:$true] %s1187_s17  ;;  %s1190_s20 = int_to_ptr.hbm [resolvable:$true] %s1189_s20 }
  0x1c   :  { %v195_v31 = vld [vmem:[#allocation3 + $0x42] sm:$0xff]  ;;  %v163_v35 = vadd.f32 %v147_v30, %v131_v29  ;;  %v115_v39 = vmul.f32 0.026913157, %v99_v28  ;;  %v149_v42 = vld [vmem:[#allocation3 + $0x53] sm:$0xff]  ;;  %v242_v44 = vadd.f32 %v226_v33, %v210_v17  ;;  %v225_v45 = vadd.f32 %v177_v34, %v113_v27  ;;  %v148_v57 = vld [vmem:[#allocation3 + $0x4b] sm:$0xf] }
  0x1d   :  { %v240_v32 = vadd.f32 %v224_v21, %v208_v1  ;;  %v211_v40 = vmul.f32 0.4794383, %v195_v31  ;;  %v197_v43 = vld [vmem:[#allocation3 + $0x52] sm:$0xff]  ;;  %v165_v47 = vadd.f32 %v149_v42, %v133_v38  ;;  %v68_v48 = vld [vmem:[#allocation3 + $0x48] sm:$0xf]  ;;  %v71_v20 = vld [vmem:[#allocation3 + $0x60] sm:$0xff] }
  0x1e   :  { %v179_v46 = vmul.f32 0.23336768, %v163_v35  ;;  %v117_v50 = vmul.f32 0.026913157, %v101_v41  ;;  %v213_v51 = vmul.f32 0.4794383, %v197_v43  ;;  %v100_v52 = vadd.f32 %v84_v49, %v68_v48 }
  0x1f   :  { %277 = vrot.lane.b32.xlu2 %v240_v32, %s1266_s0  ;;  %v132_v53 = vld [vmem:[#allocation3 + $0x49] sm:$0xf]  ;;  %v241_v54 = vadd.f32 %v225_v45, %v209_v24  ;;  %v181_v56 = vmul.f32 0.23336768, %v165_v47  ;;  %v70_v62 = vld [vmem:[#allocation3 + $0x58] sm:$0xf] }
  0x20   :  { %v227_v55 = vadd.f32 %v179_v46, %v115_v39  ;;  %v196_v58 = vld [vmem:[#allocation3 + $0x4a] sm:$0xf]  ;;  %v116_v59 = vmul.f32 0.026913157, %v100_v52  ;;  %v164_v60 = vadd.f32 %v148_v57, %v132_v53  ;;  %v86_v1 = vld [vmem:[#allocation3 + $0x5c] sm:$0xf] }
  0x21   :  { %v212_v61 = vmul.f32 0.4794383, %v196_v58  ;;  %v229_v0 = vadd.f32 %v181_v56, %v117_v50  ;;  %v134_v2 = vld [vmem:[#allocation3 + $0x59] sm:$0xf]  ;;  %v102_v5 = vadd.f32 %v86_v1, %v70_v62  ;;  %v72_v8 = vld [vmem:[#allocation3 + $0x68] sm:$0xf] }
  0x22   :  { %281 = vrot.lane.b32.xlu1 %v242_v44, %s1266_s0  ;;  %v243_v63 = vadd.f32 %v227_v55, %v211_v40  ;;  %v150_v3 = vld [vmem:[#allocation3 + $0x5b] sm:$0xf]  ;;  %279 = vrot.lane.b32.xlu0 %v241_v54, %s1266_s0  ;;  %v180_v4 = vmul.f32 0.23336768, %v164_v60  ;;  %v88_v10 = vld [vmem:[#allocation3 + $0x6c] sm:$0xf] }
  0x23   :  { %v166_v6 = vadd.f32 %v150_v3, %v134_v2  ;;  %v198_v7 = vld [vmem:[#allocation3 + $0x5a] sm:$0xf]  ;;  %v136_v11 = vld [vmem:[#allocation3 + $0x69] sm:$0xf]  ;;  %v118_v13 = vmul.f32 0.026913157, %v102_v5  ;;  %v104_v15 = vadd.f32 %v88_v10, %v72_v8  ;;  %v245_v17 = vadd.f32 %v229_v0, %v213_v51 }
  0x24   :  { %v214_v9 = vmul.f32 0.4794383, %v198_v7  ;;  %v228_v12 = vadd.f32 %v180_v4, %v116_v59  ;;  %v152_v16 = vld [vmem:[#allocation3 + $0x6b] sm:$0xf]  ;;  %v135_v25 = vld [vmem:[#allocation3 + $0x61] sm:$0xff]  ;;  %v73_v31 = vld [vmem:[#allocation3 + $0x70] sm:$0xff] }
  0x25   :  { %v182_v14 = vmul.f32 0.23336768, %v166_v6  ;;  %v168_v18 = vadd.f32 %v152_v16, %v136_v11  ;;  %v200_v19 = vld [vmem:[#allocation3 + $0x6a] sm:$0xf]  ;;  %v120_v24 = vmul.f32 0.026913157, %v104_v15 }
  0x26   :  { %v87_v21 = vld [vmem:[#allocation3 + $0x64] sm:$0xff]  ;;  %v244_v22 = vadd.f32 %v228_v12, %v212_v61  ;;  %v89_v32 = vld [vmem:[#allocation3 + $0x74] sm:$0xff]  ;;  %v216_v34 = vmul.f32 0.4794383, %v200_v19  ;;  %v333_v43 = vld [vmem:[#allocation3] sm:$0x1] }
  0x27   :  { %283 = vrot.lane.b32.xlu2 %v243_v63, %s1266_s0  ;;  %v230_v23 = vadd.f32 %v182_v14, %v118_v13  ;;  %v151_v26 = vld [vmem:[#allocation3 + $0x63] sm:$0xff]  ;;  %v184_v27 = vmul.f32 0.23336768, %v168_v18  ;;  %v103_v28 = vadd.f32 %v87_v21, %v71_v20  ;;  %v105_v35 = vadd.f32 %v89_v32, %v73_v31  ;;  %v137_v36 = vld [vmem:[#allocation3 + $0x71] sm:$0xff]  ;;  %v349_v50 = vld [vmem:[#allocation3 + $0x1] sm:$0x1] }
  0x28   :  { %v167_v29 = vadd.f32 %v151_v26, %v135_v25  ;;  %v199_v30 = vld [vmem:[#allocation3 + $0x62] sm:$0xff]  ;;  %v153_v37 = vld [vmem:[#allocation3 + $0x73] sm:$0xff]  ;;  %v341_v49 = vmul.f32 0.4794383, %v333_v43  ;;  %v357_v51 = vmul.f32 0.23336768, %v349_v50 }
  0x29   :  { %v246_v33 = vadd.f32 %v230_v23, %v214_v9  ;;  %v201_v38 = vld [vmem:[#allocation3 + $0x72] sm:$0xff]  ;;  %v232_v39 = vadd.f32 %v184_v27, %v120_v24  ;;  %v119_v40 = vmul.f32 0.026913157, %v103_v28  ;;  %v169_v42 = vadd.f32 %v153_v37, %v137_v36  ;;  %v373_v52 = vld [vmem:[#allocation3 + $0x2] sm:$0x1] }
  0x2a   :  { %287 = vrot.lane.b32.xlu1 %v245_v17, %s1266_s0  ;;  %v183_v41 = vmul.f32 0.23336768, %v167_v29  ;;  %285 = vrot.lane.b32.xlu0 %v244_v22, %s1266_s0  ;;  %v215_v44 = vmul.f32 0.4794383, %v199_v30  ;;  %v121_v45 = vmul.f32 0.026913157, %v105_v35  ;;  %v365_v8 = vadd.f32 %v357_v51, %v341_v49 }
  0x2b   :  { %v217_v46 = vmul.f32 0.4794383, %v201_v38  ;;  %v185_v48 = vmul.f32 0.23336768, %v169_v42  ;;  %v74_v53 = vld [vmem:[#allocation3 + $0x78] sm:$0xf]  ;;  %v248_v54 = vadd.f32 %v232_v39, %v216_v34 }
  0x2c   :  { %v231_v47 = vadd.f32 %v183_v41, %v119_v40  ;;  %v90_v56 = vld [vmem:[#allocation3 + $0x7c] sm:$0xf]  ;;  %v334_v63 = vld [vmem:[#allocation3 + $0x10] sm:$0x1]  ;;  %v350_v0 = vld [vmem:[#allocation3 + $0x11] sm:$0x1] }
  0x2d   :  { %v233_v55 = vadd.f32 %v185_v48, %v121_v45  ;;  %v138_v57 = vld [vmem:[#allocation3 + $0x79] sm:$0xf]  ;;  %v106_v60 = vadd.f32 %v90_v56, %v74_v53  ;;  %v381_v1 = vmul.f32 0.026913157, %v373_v52  ;;  %v342_v3 = vmul.f32 0.4794383, %v334_v63 }
  0x2e   :  { %v154_v58 = vld [vmem:[#allocation3 + $0x7b] sm:$0xf]  ;;  %v247_v59 = vadd.f32 %v231_v47, %v215_v44  ;;  %v374_v6 = vld [vmem:[#allocation3 + $0x12] sm:$0x1]  ;;  %v358_v9 = vmul.f32 0.23336768, %v350_v0 }
  0x2f   :  { %289 = vrot.lane.b32.xlu2 %v246_v33, %s1266_s0  ;;  %v170_v61 = vadd.f32 %v154_v58, %v138_v57  ;;  %v202_v62 = vld [vmem:[#allocation3 + $0x7a] sm:$0xf]  ;;  %v122_v4 = vmul.f32 0.026913157, %v106_v60  ;;  %v249_v7 = vadd.f32 %v233_v55, %v217_v46  ;;  %v336_v10 = vld [vmem:[#allocation3 + $0x30] sm:$0x1]  ;;  %v389_v22 = vadd.f32 %v381_v1, %v365_v8 }
  0x30   :  { %v218_v2 = vmul.f32 0.4794383, %v202_v62  ;;  %v352_v11 = vld [vmem:[#allocation3 + $0x31] sm:$0x1]  ;;  %v382_v13 = vmul.f32 0.026913157, %v374_v6  ;;  %v366_v23 = vadd.f32 %v358_v9, %v342_v3 }
  0x31   :  { %v186_v5 = vmul.f32 0.23336768, %v170_v61  ;;  %v344_v14 = vmul.f32 0.4794383, %v336_v10  ;;  %v376_v15 = vld [vmem:[#allocation3 + $0x32] sm:$0x1] }
  0x32   :  { %293 = vrot.lane.b32.xlu1 %v248_v54, %s1266_s0  ;;  %291 = vrot.lane.b32.xlu0 %v247_v59, %s1266_s0  ;;  %v360_v16 = vmul.f32 0.23336768, %v352_v11  ;;  %v335_v17 = vld [vmem:[#allocation3 + $0x20] sm:$0x1]  ;;  %v351_v18 = vld [vmem:[#allocation3 + $0x21] sm:$0x1]  ;;  %v390_v37 = vadd.f32 %v382_v13, %v366_v23 }
  0x33   :  { %v234_v12 = vadd.f32 %v186_v5, %v122_v4  ;;  %v384_v19 = vmul.f32 0.026913157, %v376_v15  ;;  %v343_v20 = vmul.f32 0.4794383, %v335_v17  ;;  %v375_v21 = vld [vmem:[#allocation3 + $0x22] sm:$0x1] }
  0x34   :  { %v359_v24 = vmul.f32 0.23336768, %v351_v18  ;;  %v337_v25 = vld [vmem:[#allocation3 + $0x40] sm:$0x1]  ;;  %v353_v26 = vld [vmem:[#allocation3 + $0x41] sm:$0x1]  ;;  %v368_v38 = vadd.f32 %v360_v16, %v344_v14 }
  0x35   :  { %v250_v27 = vadd.f32 %v234_v12, %v218_v2  ;;  %v383_v28 = vmul.f32 0.026913157, %v375_v21  ;;  %v345_v29 = vmul.f32 0.4794383, %v337_v25  ;;  %v377_v30 = vld [vmem:[#allocation3 + $0x42] sm:$0x1] }
  0x36   :  { %v361_v31 = vmul.f32 0.23336768, %v353_v26  ;;  %v339_v32 = vld [vmem:[#allocation3 + $0x60] sm:$0x1]  ;;  %v355_v33 = vld [vmem:[#allocation3 + $0x61] sm:$0x1]  ;;  %v367_v42 = vadd.f32 %v359_v24, %v343_v20  ;;  %v392_v52 = vadd.f32 %v384_v19, %v368_v38 }
  0x37   :  { %295 = vrot.lane.b32.xlu2 %v249_v7, %s1266_s0  ;;  %v385_v34 = vmul.f32 0.026913157, %v377_v30  ;;  %v347_v35 = vmul.f32 0.4794383, %v339_v32  ;;  %v379_v36 = vld [vmem:[#allocation3 + $0x62] sm:$0x1] }
  0x38   :  { %v363_v39 = vmul.f32 0.23336768, %v355_v33  ;;  %v338_v40 = vld [vmem:[#allocation3 + $0x50] sm:$0x1]  ;;  %v354_v41 = vld [vmem:[#allocation3 + $0x51] sm:$0x1]  ;;  %v369_v53 = vadd.f32 %v361_v31, %v345_v29  ;;  %v391_v57 = vadd.f32 %v383_v28, %v367_v42 }
  0x39   :  { %v387_v43 = vmul.f32 0.026913157, %v379_v36  ;;  %v346_v44 = vmul.f32 0.4794383, %v338_v40  ;;  %v378_v45 = vld [vmem:[#allocation3 + $0x52] sm:$0x1] }
  0x3a   :  { %405 = vrot.lane.b32.xlu1 %v389_v22, %s1266_s0  ;;  %297 = vrot.lane.b32.xlu0 %v250_v27, %s1266_s0  ;;  %v362_v46 = vmul.f32 0.23336768, %v354_v41  ;;  %v340_v47 = vld [vmem:[#allocation3 + $0x70] sm:$0x1]  ;;  %v356_v48 = vld [vmem:[#allocation3 + $0x71] sm:$0x1]  ;;  %v393_v3 = vadd.f32 %v385_v34, %v369_v53  ;;  %v371_v4 = vadd.f32 %v363_v39, %v347_v35 }
  0x3b   :  { %v386_v49 = vmul.f32 0.026913157, %v378_v45  ;;  %v348_v50 = vmul.f32 0.4794383, %v340_v47  ;;  %v380_v51 = vld [vmem:[#allocation3 + $0x72] sm:$0x1] }
  0x3c   :  { %v364_v54 = vmul.f32 0.23336768, %v356_v48  ;;  %v439_v55 = vld [vmem:[#allocation3 + $0x10] sm:$0x1]  ;;  %v455_v56 = vld [vmem:[#allocation3 + $0x11] sm:$0x1]  ;;  %v370_v8 = vadd.f32 %v362_v46, %v346_v44  ;;  %v395_v18 = vadd.f32 %v387_v43, %v371_v4 }
  0x3d   :  { %v388_v58 = vmul.f32 0.026913157, %v380_v51  ;;  %v447_v59 = vmul.f32 0.23336768, %v439_v55  ;;  %v479_v60 = vld [vmem:[#allocation3 + $0x12] sm:$0x1] }
  0x3e   :  { %v463_v61 = vmul.f32 0.4794383, %v455_v56  ;;  %v503_v62 = vld [vmem:[#allocation3 + $0x13] sm:$0x1]  ;;  %v438_v63 = vld [vmem:[#allocation3] sm:$0x1]  ;;  %v372_v19 = vadd.f32 %v364_v54, %v348_v50  ;;  %v394_v24 = vadd.f32 %v386_v49, %v370_v8 }
  0x3f   :  { %407 = vrot.lane.b32.xlu2 %v390_v37, %s1266_s0  ;;  %v487_v0 = vmul.f32 0.23336768, %v479_v60  ;;  %v511_v1 = vmul.f32 0.026913157, %v503_v62  ;;  %v454_v2 = vld [vmem:[#allocation3 + $0x1] sm:$0x1] }
  0x40   :  { %v446_v5 = vmul.f32 0.23336768, %v438_v63  ;;  %v478_v6 = vld [vmem:[#allocation3 + $0x2] sm:$0x1]  ;;  %v502_v7 = vld [vmem:[#allocation3 + $0x3] sm:$0x1]  ;;  %v471_v20 = vadd.f32 %v463_v61, %v447_v59  ;;  %v396_v35 = vadd.f32 %v388_v58, %v372_v19 }
  0x41   :  { %v462_v9 = vmul.f32 0.4794383, %v454_v2  ;;  %v486_v10 = vmul.f32 0.23336768, %v478_v6  ;;  %v440_v11 = vld [vmem:[#allocation3 + $0x20] sm:$0x1] }
  0x42   :  { %411 = vrot.lane.b32.xlu1 %v392_v52, %s1266_s0  ;;  %409 = vrot.lane.b32.xlu0 %v391_v57, %s1266_s0  ;;  %v510_v12 = vmul.f32 0.026913157, %v502_v7  ;;  %v456_v13 = vld [vmem:[#allocation3 + $0x21] sm:$0x1]  ;;  %v480_v14 = vld [vmem:[#allocation3 + $0x22] sm:$0x1]  ;;  %v495_v36 = vadd.f32 %v487_v0, %v471_v20 }
  0x43   :  { %v448_v15 = vmul.f32 0.23336768, %v440_v11  ;;  %v464_v16 = vmul.f32 0.4794383, %v456_v13  ;;  %v504_v17 = vld [vmem:[#allocation3 + $0x23] sm:$0x1]  ;;  %v470_v25 = vadd.f32 %v462_v9, %v446_v5 }
  0x44   :  { %v488_v21 = vmul.f32 0.23336768, %v480_v14  ;;  %v442_v22 = vld [vmem:[#allocation3 + $0x40] sm:$0x1]  ;;  %v458_v23 = vld [vmem:[#allocation3 + $0x41] sm:$0x1]  ;;  %v519_v51 = vadd.f32 %v511_v1, %v495_v36 }
  0x45   :  { %v512_v26 = vmul.f32 0.026913157, %v504_v17  ;;  %v450_v27 = vmul.f32 0.23336768, %v442_v22  ;;  %v482_v28 = vld [vmem:[#allocation3 + $0x42] sm:$0x1]  ;;  %v472_v37 = vadd.f32 %v464_v16, %v448_v15  ;;  %v494_v41 = vadd.f32 %v486_v10, %v470_v25 }
  0x46   :  { %v466_v29 = vmul.f32 0.4794383, %v458_v23  ;;  %v506_v30 = vld [vmem:[#allocation3 + $0x43] sm:$0x1]  ;;  %v441_v31 = vld [vmem:[#allocation3 + $0x30] sm:$0x1] }
  0x47   :  { %413 = vrot.lane.b32.xlu2 %v393_v3, %s1266_s0  ;;  %v490_v32 = vmul.f32 0.23336768, %v482_v28  ;;  %v514_v33 = vmul.f32 0.026913157, %v506_v30  ;;  %v457_v34 = vld [vmem:[#allocation3 + $0x31] sm:$0x1]  ;;  %v496_v52 = vadd.f32 %v488_v21, %v472_v37  ;;  %v518_v57 = vadd.f32 %v510_v12, %v494_v41 }
  0x48   :  { %v449_v38 = vmul.f32 0.23336768, %v441_v31  ;;  %v481_v39 = vld [vmem:[#allocation3 + $0x32] sm:$0x1]  ;;  %v505_v40 = vld [vmem:[#allocation3 + $0x33] sm:$0x1]  ;;  %v474_v53 = vadd.f32 %v466_v29, %v450_v27 }
  0x49   :  { %v465_v42 = vmul.f32 0.4794383, %v457_v34  ;;  %v489_v43 = vmul.f32 0.23336768, %v481_v39  ;;  %v443_v44 = vld [vmem:[#allocation3 + $0x50] sm:$0x1]  ;;  %v520_v5 = vadd.f32 %v512_v26, %v496_v52 }
  0x4a   :  { %417 = vrot.lane.b32.xlu1 %v395_v18, %s1266_s0  ;;  %415 = vrot.lane.b32.xlu0 %v394_v24, %s1266_s0  ;;  %v513_v45 = vmul.f32 0.026913157, %v505_v40  ;;  %v459_v46 = vld [vmem:[#allocation3 + $0x51] sm:$0x1]  ;;  %v483_v47 = vld [vmem:[#allocation3 + $0x52] sm:$0x1]  ;;  %v498_v1 = vadd.f32 %v490_v32, %v474_v53 }
  0x4b   :  { %v451_v48 = vmul.f32 0.23336768, %v443_v44  ;;  %v467_v49 = vmul.f32 0.4794383, %v459_v46  ;;  %v507_v50 = vld [vmem:[#allocation3 + $0x53] sm:$0x1]  ;;  %v473_v58 = vadd.f32 %v465_v42, %v449_v38 }
  0x4c   :  { %v491_v54 = vmul.f32 0.23336768, %v483_v47  ;;  %v445_v55 = vld [vmem:[#allocation3 + $0x70] sm:$0x1]  ;;  %v461_v56 = vld [vmem:[#allocation3 + $0x71] sm:$0x1]  ;;  %v522_v20 = vadd.f32 %v514_v33, %v498_v1 }
  0x4d   :  { %v515_v59 = vmul.f32 0.026913157, %v507_v50  ;;  %v453_v60 = vmul.f32 0.23336768, %v445_v55  ;;  %v485_v61 = vld [vmem:[#allocation3 + $0x72] sm:$0x1]  ;;  %v475_v6 = vadd.f32 %v467_v49, %v451_v48  ;;  %v497_v10 = vadd.f32 %v489_v43, %v473_v58 }
  0x4e   :  { %v469_v62 = vmul.f32 0.4794383, %v461_v56  ;;  %v509_v63 = vld [vmem:[#allocation3 + $0x73] sm:$0x1]  ;;  %v444_v0 = vld [vmem:[#allocation3 + $0x60] sm:$0x1] }
  0x4f   :  { %419 = vrot.lane.b32.xlu2 %v396_v35, %s1266_s0  ;;  %v493_v2 = vmul.f32 0.23336768, %v485_v61  ;;  %v517_v3 = vmul.f32 0.026913157, %v509_v63  ;;  %v460_v4 = vld [vmem:[#allocation3 + $0x61] sm:$0x1]  ;;  %v499_v21 = vadd.f32 %v491_v54, %v475_v6  ;;  %v521_v26 = vadd.f32 %v513_v45, %v497_v10 }
  0x50   :  { %v452_v7 = vmul.f32 0.23336768, %v444_v0  ;;  %v484_v8 = vld [vmem:[#allocation3 + $0x62] sm:$0x1]  ;;  %v508_v9 = vld [vmem:[#allocation3 + $0x63] sm:$0x1]  ;;  %v477_v22 = vadd.f32 %v469_v62, %v453_v60 }
  0x51   :  { %v468_v11 = vmul.f32 0.4794383, %v460_v4  ;;  %v492_v12 = vmul.f32 0.23336768, %v484_v8  ;;  %v566_v13 = vld [vmem:[#allocation3 + $0xc] sm:$0x1]  ;;  %v523_v33 = vadd.f32 %v515_v59, %v499_v21 }
  0x52   :  { %536 = vrot.lane.b32.xlu1 %v519_v51, %s1266_s0  ;;  %534 = vrot.lane.b32.xlu0 %v518_v57, %s1266_s0  ;;  %v516_v14 = vmul.f32 0.026913157, %v508_v9  ;;  %v582_v15 = vld [vmem:[#allocation3 + $0xd] sm:$0x1]  ;;  %v606_v16 = vld [vmem:[#allocation3 + $0xe] sm:$0x1]  ;;  %v501_v39 = vadd.f32 %v493_v2, %v477_v22 }
  0x53   :  { %v574_v17 = vmul.f32 0.026913157, %v566_v13  ;;  %v590_v18 = vmul.f32 0.23336768, %v582_v15  ;;  %v630_v19 = vld [vmem:[#allocation3 + $0xf] sm:$0x1]  ;;  %v476_v27 = vadd.f32 %v468_v11, %v452_v7 }
  0x54   :  { %v614_v23 = vmul.f32 0.4794383, %v606_v16  ;;  %v568_v24 = vld [vmem:[#allocation3 + $0x2c] sm:$0x1]  ;;  %v584_v25 = vld [vmem:[#allocation3 + $0x2d] sm:$0x1]  ;;  %v525_v54 = vadd.f32 %v517_v3, %v501_v39 }
  0x55   :  { %v638_v28 = vmul.f32 0.23336768, %v630_v19  ;;  %v576_v29 = vmul.f32 0.026913157, %v568_v24  ;;  %v608_v30 = vld [vmem:[#allocation3 + $0x2e] sm:$0x1]  ;;  %v598_v35 = vadd.f32 %v590_v18, %v574_v17  ;;  %v500_v43 = vadd.f32 %v492_v12, %v476_v27 }
  0x56   :  { %v592_v31 = vmul.f32 0.23336768, %v584_v25  ;;  %v632_v32 = vld [vmem:[#allocation3 + $0x2f] sm:$0x1]  ;;  %v567_v34 = vld [vmem:[#allocation3 + $0x1c] sm:$0x1] }
  0x57   :  { %538 = vrot.lane.b32.xlu2 %v520_v5, %s1266_s0  ;;  %v616_v36 = vmul.f32 0.4794383, %v608_v30  ;;  %v640_v37 = vmul.f32 0.23336768, %v632_v32  ;;  %v583_v38 = vld [vmem:[#allocation3 + $0x1d] sm:$0x1]  ;;  %v622_v50 = vadd.f32 %v614_v23, %v598_v35  ;;  %v524_v59 = vadd.f32 %v516_v14, %v500_v43 }
  0x58   :  { %v575_v40 = vmul.f32 0.026913157, %v567_v34  ;;  %v607_v41 = vld [vmem:[#allocation3 + $0x1e] sm:$0x1]  ;;  %v631_v42 = vld [vmem:[#allocation3 + $0x1f] sm:$0x1]  ;;  %v600_v55 = vadd.f32 %v592_v31, %v576_v29 }
  0x59   :  { %v591_v44 = vmul.f32 0.23336768, %v583_v38  ;;  %v615_v45 = vmul.f32 0.4794383, %v607_v41  ;;  %v569_v46 = vld [vmem:[#allocation3 + $0x3c] sm:$0x1]  ;;  %v646_v5 = vadd.f32 %v638_v28, %v622_v50 }
  0x5a   :  { %542 = vrot.lane.b32.xlu1 %v522_v20, %s1266_s0  ;;  %540 = vrot.lane.b32.xlu0 %v521_v26, %s1266_s0  ;;  %v639_v47 = vmul.f32 0.23336768, %v631_v42  ;;  %v585_v48 = vld [vmem:[#allocation3 + $0x3d] sm:$0x1]  ;;  %v609_v49 = vld [vmem:[#allocation3 + $0x3e] sm:$0x1]  ;;  %v624_v8 = vadd.f32 %v616_v36, %v600_v55 }
  0x5b   :  { %v577_v51 = vmul.f32 0.026913157, %v569_v46  ;;  %v593_v52 = vmul.f32 0.23336768, %v585_v48  ;;  %v633_v53 = vld [vmem:[#allocation3 + $0x3f] sm:$0x1]  ;;  %v599_v60 = vadd.f32 %v591_v44, %v575_v40 }
  0x5c   :  { %v617_v56 = vmul.f32 0.4794383, %v609_v49  ;;  %v571_v57 = vld [vmem:[#allocation3 + $0x5c] sm:$0x1]  ;;  %v587_v58 = vld [vmem:[#allocation3 + $0x5d] sm:$0x1]  ;;  %v648_v20 = vadd.f32 %v640_v37, %v624_v8 }
  0x5d   :  { %v641_v61 = vmul.f32 0.23336768, %v633_v53  ;;  %v579_v62 = vmul.f32 0.026913157, %v571_v57  ;;  %v611_v63 = vld [vmem:[#allocation3 + $0x5e] sm:$0x1]  ;;  %v601_v3 = vadd.f32 %v593_v52, %v577_v51  ;;  %v623_v12 = vadd.f32 %v615_v45, %v599_v60 }
  0x5e   :  { %v595_v0 = vmul.f32 0.23336768, %v587_v58  ;;  %v635_v2 = vld [vmem:[#allocation3 + $0x5f] sm:$0x1]  ;;  %v570_v4 = vld [vmem:[#allocation3 + $0x4c] sm:$0x1] }
  0x5f   :  { %544 = vrot.lane.b32.xlu2 %v523_v33, %s1266_s0  ;;  %v619_v1 = vmul.f32 0.4794383, %v611_v63  ;;  %v643_v6 = vmul.f32 0.23336768, %v635_v2  ;;  %v586_v7 = vld [vmem:[#allocation3 + $0x4d] sm:$0x1]  ;;  %v625_v21 = vadd.f32 %v617_v56, %v601_v3  ;;  %v647_v25 = vadd.f32 %v639_v47, %v623_v12 }
  0x60   :  { %v578_v9 = vmul.f32 0.026913157, %v570_v4  ;;  %v594_v10 = vmul.f32 0.23336768, %v586_v7  ;;  %v610_v11 = vld [vmem:[#allocation3 + $0x4e] sm:$0x1]  ;;  %v603_v22 = vadd.f32 %v595_v0, %v579_v62 }
  0x61   :  { %v618_v13 = vmul.f32 0.4794383, %v610_v11  ;;  %v634_v14 = vld [vmem:[#allocation3 + $0x4f] sm:$0x1]  ;;  %v572_v15 = vld [vmem:[#allocation3 + $0x6c] sm:$0x1]  ;;  %v649_v34 = vadd.f32 %v641_v61, %v625_v21 }
  0x62   :  { %548 = vrot.lane.b32.xlu1 %v525_v54, %s1266_s0  ;;  %546 = vrot.lane.b32.xlu0 %v524_v59, %s1266_s0  ;;  %v588_v16 = vld [vmem:[#allocation3 + $0x6d] sm:$0x1]  ;;  %v1267_v17 = vmov 0.0   ;;  %v580_v18 = vmul.f32 0.026913157, %v572_v15  ;;  %v602_v26 = vadd.f32 %v594_v10, %v578_v9  ;;  %v627_v35 = vadd.f32 %v619_v1, %v603_v22 }
  0x63   :  { %30 = vst.msk [vmem:[#allocation2 + $0x20] sm:$0xff] %vm25_vm0, %v1267_v17  ;;  %v596_v19 = vmul.f32 0.23336768, %v588_v16  ;;  %v612_v23 = vld [vmem:[#allocation3 + $0x6e] sm:$0x1] }
  0x64   :  { %31 = vst.msk [vmem:[#allocation2 + $0x28] sm:$0xff] %vm25_vm0, %v1267_v17  ;;  %v636_v24 = vld [vmem:[#allocation3 + $0x6f] sm:$0x1]  ;;  %v642_v27 = vmul.f32 0.23336768, %v634_v14  ;;  %v626_v33 = vadd.f32 %v618_v13, %v602_v26  ;;  %v651_v45 = vadd.f32 %v643_v6, %v627_v35 }
  0x65   :  { %47 = vst.msk [vmem:[#allocation2 + $0x20] sm:$0xff] %vm42_vm1, %v1267_v17  ;;  %v620_v28 = vmul.f32 0.4794383, %v612_v23  ;;  %v694_v29 = vld [vmem:[#allocation3 + $0xd] sm:$0x1]  ;;  %v604_v36 = vadd.f32 %v596_v19, %v580_v18 }
  0x66   :  { %48 = vst.msk [vmem:[#allocation2 + $0x28] sm:$0xff] %vm42_vm1, %v1267_v17  ;;  %v710_v30 = vld [vmem:[#allocation3 + $0xe] sm:$0x1]  ;;  %v644_v31 = vmul.f32 0.23336768, %v636_v24  ;;  %v650_v49 = vadd.f32 %v642_v27, %v626_v33 }
  0x67   :  { %662 = vrot.lane.b32.xlu2 %v646_v5, %s1266_s0  ;;  %26 = vst.msk [vmem:[#allocation2] sm:$0xff] %vm25_vm0, %v1267_v17  ;;  %v702_v32 = vmul.f32 0.026913157, %v694_v29  ;;  %v734_v37 = vld [vmem:[#allocation3 + $0xf] sm:$0x1]  ;;  %v628_v46 = vadd.f32 %v620_v28, %v604_v36 }
  0x68   :  { %27 = vst.msk [vmem:[#allocation2 + $0x8] sm:$0xff] %vm25_vm0, %v1267_v17  ;;  %v573_v38 = vld [vmem:[#allocation3 + $0x7c] sm:$0x1]  ;;  %v718_v39 = vmul.f32 0.23336768, %v710_v30 }
  0x69   :  { %28 = vst.msk [vmem:[#allocation2 + $0x10] sm:$0xff] %vm25_vm0, %v1267_v17  ;;  %v581_v40 = vmul.f32 0.026913157, %v573_v38  ;;  %v589_v41 = vld [vmem:[#allocation3 + $0x7d] sm:$0x1]  ;;  %v652_v58 = vadd.f32 %v644_v31, %v628_v46 }
  0x6a   :  { %666 = vrot.lane.b32.xlu1 %v648_v20, %s1266_s0  ;;  %664 = vrot.lane.b32.xlu0 %v647_v25, %s1266_s0  ;;  %29 = vst.msk [vmem:[#allocation2 + $0x18] sm:$0xff] %vm25_vm0, %v1267_v17  ;;  %v613_v42 = vld [vmem:[#allocation3 + $0x7e] sm:$0x1]  ;;  %v742_v43 = vmul.f32 0.4794383, %v734_v37  ;;  %v726_v59 = vadd.f32 %v718_v39, %v702_v32 }
  0x6b   :  { %32 = vst.msk [vmem:[#allocation2 + $0x30] sm:$0xff] %vm25_vm0, %v1267_v17  ;;  %v597_v44 = vmul.f32 0.23336768, %v589_v41  ;;  %v637_v47 = vld [vmem:[#allocation3 + $0x7f] sm:$0x1] }
  0x6c   :  { %33 = vst.msk [vmem:[#allocation2 + $0x38] sm:$0xff] %vm25_vm0, %v1267_v17  ;;  %v695_v48 = vld [vmem:[#allocation3 + $0x1d] sm:$0x1]  ;;  %v621_v52 = vmul.f32 0.4794383, %v613_v42  ;;  %v750_v6 = vadd.f32 %v742_v43, %v726_v59 }
  0x6d   :  { %34 = vst.msk [vmem:[#allocation2 + $0x40] sm:$0xff] %vm25_vm0, %v1267_v17  ;;  %v605_v51 = vadd.f32 %v597_v44, %v581_v40  ;;  %v645_v53 = vmul.f32 0.23336768, %v637_v47  ;;  %v711_v54 = vld [vmem:[#allocation3 + $0x1e] sm:$0x1] }
  0x6e   :  { %v735_v55 = vld [vmem:[#allocation3 + $0x1f] sm:$0x1]  ;;  %35 = vst.msk [vmem:[#allocation2 + $0x48] sm:$0xff] %vm25_vm0, %v1267_v17  ;;  %v703_v56 = vmul.f32 0.026913157, %v695_v48 }
  0x6f   :  { %668 = vrot.lane.b32.xlu2 %v649_v34, %s1266_s0  ;;  %v719_v57 = vmul.f32 0.23336768, %v711_v54  ;;  %36 = vst.msk [vmem:[#allocation2 + $0x50] sm:$0xff] %vm25_vm0, %v1267_v17  ;;  %v697_v60 = vld [vmem:[#allocation3 + $0x3d] sm:$0x1]  ;;  %v629_v62 = vadd.f32 %v621_v52, %v605_v51 }
  0x70   :  { %v713_v61 = vld [vmem:[#allocation3 + $0x3e] sm:$0x1]  ;;  %37 = vst.msk [vmem:[#allocation2 + $0x58] sm:$0xff] %vm25_vm0, %v1267_v17  ;;  %v743_v63 = vmul.f32 0.4794383, %v735_v55 }
  0x71   :  { %v276_v50 = vpop.permute.xlu2 %275  ;;  %v705_v0 = vmul.f32 0.026913157, %v697_v60  ;;  %38 = vst.msk [vmem:[#allocation2 + $0x60] sm:$0xff] %vm25_vm0, %v1267_v17  ;;  %v737_v2 = vld [vmem:[#allocation3 + $0x3f] sm:$0x1]  ;;  %v727_v7 = vadd.f32 %v719_v57, %v703_v56  ;;  %v653_v9 = vadd.f32 %v645_v53, %v629_v62 }
  0x72   :  { %321 = vst.msk [vmem:[#allocation2 + $0x22] sm:$0xff] %vm315_vm2, %v276_v50  ;;  %672 = vrot.lane.b32.xlu1 %v651_v45, %s1266_s0  ;;  %670 = vrot.lane.b32.xlu0 %v650_v49, %s1266_s0  ;;  %v696_v4 = vld [vmem:[#allocation3 + $0x2d] sm:$0x1]  ;;  %v721_v5 = vmul.f32 0.23336768, %v713_v61 }
  0x73   :  { %39 = vst.msk [vmem:[#allocation2 + $0x68] sm:$0xff] %vm25_vm0, %v1267_v17  ;;  %v745_v1 = vmul.f32 0.4794383, %v737_v2  ;;  %v704_v8 = vmul.f32 0.026913157, %v696_v4  ;;  %v751_v18 = vadd.f32 %v743_v63, %v727_v7 }
  0x74   :  { %40 = vst.msk [vmem:[#allocation2 + $0x70] sm:$0xff] %vm25_vm0, %v1267_v17  ;;  %v712_v3 = vld [vmem:[#allocation3 + $0x2e] sm:$0x1]  ;;  %v736_v11 = vld [vmem:[#allocation3 + $0x2f] sm:$0x1]  ;;  %v729_v19 = vadd.f32 %v721_v5, %v705_v0 }
  0x75   :  { %41 = vst.msk [vmem:[#allocation2 + $0x78] sm:$0xff] %vm25_vm0, %v1267_v17  ;;  %v720_v10 = vmul.f32 0.23336768, %v712_v3  ;;  %v698_v13 = vld [vmem:[#allocation3 + $0x4d] sm:$0x1] }
  0x76   :  { %43 = vst.msk [vmem:[#allocation2] sm:$0xff] %vm42_vm1, %v1267_v17  ;;  %v714_v14 = vld [vmem:[#allocation3 + $0x4e] sm:$0x1]  ;;  %v706_v15 = vmul.f32 0.026913157, %v698_v13  ;;  %v753_v29 = vadd.f32 %v745_v1, %v729_v19 }
  0x77   :  { %674 = vrot.lane.b32.xlu2 %v652_v58, %s1266_s0  ;;  %44 = vst.msk [vmem:[#allocation2 + $0x8] sm:$0xff] %vm42_vm1, %v1267_v17  ;;  %v722_v16 = vmul.f32 0.23336768, %v714_v14  ;;  %v738_v20 = vld [vmem:[#allocation3 + $0x4f] sm:$0x1]  ;;  %v728_v22 = vadd.f32 %v720_v10, %v704_v8 }
  0x78   :  { %45 = vst.msk [vmem:[#allocation2 + $0x10] sm:$0xff] %vm42_vm1, %v1267_v17  ;;  %v700_v21 = vld [vmem:[#allocation3 + $0x6d] sm:$0x1]  ;;  %v744_v23 = vmul.f32 0.4794383, %v736_v11 }
  0x79   :  { %v278_v12 = vpop.permute.xlu2 %277  ;;  %46 = vst.msk [vmem:[#allocation2 + $0x18] sm:$0xff] %vm42_vm1, %v1267_v17  ;;  %v746_v24 = vmul.f32 0.4794383, %v738_v20  ;;  %v708_v25 = vmul.f32 0.026913157, %v700_v21  ;;  %v730_v30 = vadd.f32 %v722_v16, %v706_v15 }
  0x7a   :  { %766 = vrot.lane.b32.xlu1 %v750_v6, %s1266_s0  ;;  %676 = vrot.lane.b32.xlu0 %v653_v9, %s1266_s0  ;;  %49 = vst.msk [vmem:[#allocation2 + $0x30] sm:$0xff] %vm42_vm1, %v1267_v17  ;;  %v716_v26 = vld [vmem:[#allocation3 + $0x6e] sm:$0x1]  ;;  %v740_v28 = vld [vmem:[#allocation3 + $0x6f] sm:$0x1]  ;;  %v752_v34 = vadd.f32 %v744_v23, %v728_v22 }
  0x7b   :  { %50 = vst.msk [vmem:[#allocation2 + $0x38] sm:$0xff] %vm42_vm1, %v1267_v17  ;;  %v724_v27 = vmul.f32 0.23336768, %v716_v26  ;;  %v699_v31 = vld [vmem:[#allocation3 + $0x5d] sm:$0x1]  ;;  %v754_v41 = vadd.f32 %v746_v24, %v730_v30 }
  0x7c   :  { %51 = vst.msk [vmem:[#allocation2 + $0x40] sm:$0xff] %vm42_vm1, %v1267_v17  ;;  %v715_v32 = vld [vmem:[#allocation3 + $0x5e] sm:$0x1]  ;;  %v707_v35 = vmul.f32 0.026913157, %v699_v31 }
  0x7d   :  { %52 = vst.msk [vmem:[#allocation2 + $0x48] sm:$0xff] %vm42_vm1, %v1267_v17  ;;  %v723_v36 = vmul.f32 0.23336768, %v715_v32  ;;  %v739_v38 = vld [vmem:[#allocation3 + $0x5f] sm:$0x1]  ;;  %v732_v42 = vadd.f32 %v724_v27, %v708_v25 }
  0x7e   :  { %53 = vst.msk [vmem:[#allocation2 + $0x50] sm:$0xff] %vm42_vm1, %v1267_v17  ;;  %v701_v33 = vld [vmem:[#allocation3 + $0x7d] sm:$0x1]  ;;  %v748_v39 = vmul.f32 0.4794383, %v740_v28 }
  0x7f   :  { %768 = vrot.lane.b32.xlu2 %v751_v18, %s1266_s0  ;;  %54 = vst.msk [vmem:[#allocation2 + $0x58] sm:$0xff] %vm42_vm1, %v1267_v17  ;;  %v747_v40 = vmul.f32 0.4794383, %v739_v38  ;;  %v709_v43 = vmul.f32 0.026913157, %v701_v33  ;;  %v731_v45 = vadd.f32 %v723_v36, %v707_v35 }
  0x80   :  { %55 = vst.msk [vmem:[#allocation2 + $0x60] sm:$0xff] %vm42_vm1, %v1267_v17  ;;  %v717_v44 = vld [vmem:[#allocation3 + $0x7e] sm:$0x1]  ;;  %v741_v47 = vld [vmem:[#allocation3 + $0x7f] sm:$0x1]  ;;  %v756_v50 = vadd.f32 %v748_v39, %v732_v42 }
  0x81   :  { %v284_v37 = vpop.permute.xlu2 %283  ;;  %56 = vst.msk [vmem:[#allocation2 + $0x68] sm:$0xff] %vm42_vm1, %v1267_v17  ;;  %v725_v46 = vmul.f32 0.23336768, %v717_v44  ;;  %v749_v52 = vmul.f32 0.4794383, %v741_v47  ;;  %v755_v53 = vadd.f32 %v747_v40, %v731_v45 }
  0x82   :  { %772 = vrot.lane.b32.xlu1 %v753_v29, %s1266_s0  ;;  %770 = vrot.lane.b32.xlu0 %v752_v34, %s1266_s0  ;;  %57 = vst.msk [vmem:[#allocation2 + $0x70] sm:$0xff] %vm42_vm1, %v1267_v17 }
  0x83   :  { %58 = vst.msk [vmem:[#allocation2 + $0x78] sm:$0xff] %vm42_vm1, %v1267_v17  ;;  %v733_v51 = vadd.f32 %v725_v46, %v709_v43 }
  0x84   :  { %v272_v48 = vpop.permute.xlu1 %271  ;;  %v268_v49 = vpop.permute.xlu0 %267  ;;  %322 = vst.msk [vmem:[#allocation2 + $0x2a] sm:$0xf] %vm317_vm3, %v278_v12 }
  0x85   :  { %325 = vst.msk [vmem:[#allocation2 + $0x42] sm:$0xff] %vm315_vm2, %v284_v37  ;;  %v757_v17 = vadd.f32 %v749_v52, %v733_v51 }
  0x86   :  { %319 = vst.msk [vmem:[#allocation2 + $0x12] sm:$0xff] %vm315_vm2, %v272_v48 }
  0x87   :  { %774 = vrot.lane.b32.xlu2 %v754_v41, %s1266_s0  ;;  %316 = vst.msk [vmem:[#allocation2 + $0x2] sm:$0xff] %vm315_vm2, %v268_v49 }
  0x89   :  { %v290_v54 = vpop.permute.xlu2 %289 }
  0x8a   :  { %778 = vrot.lane.b32.xlu1 %v756_v50, %s1266_s0  ;;  %328 = vst.msk [vmem:[#allocation2 + $0x5a] sm:$0xf] %vm317_vm3, %v290_v54  ;;  %776 = vrot.lane.b32.xlu0 %v755_v53, %s1266_s0 }
  0x8c   :  { %v274_v55 = vpop.permute.xlu1 %273  ;;  %v270_v56 = vpop.permute.xlu0 %269 }
  0x8d   :  { %320 = vst.msk [vmem:[#allocation2 + $0x1a] sm:$0xf] %vm317_vm3, %v274_v55 }
  0x8e   :  { %318 = vst.msk [vmem:[#allocation2 + $0xa] sm:$0xf] %vm317_vm3, %v270_v56 }
  0x8f   :  { %780 = vrot.lane.b32.xlu2 %v757_v17, %s1266_s0 }
  0x91   :  { %v296_v57 = vpop.permute.xlu2 %295 }
  0x92   :  { %331 = vst.msk [vmem:[#allocation2 + $0x72] sm:$0xff] %vm315_vm2, %v296_v57 }
  0x94   :  { %v282_v58 = vpop.permute.xlu1 %281  ;;  %v280_v59 = vpop.permute.xlu0 %279 }
  0x95   :  { %324 = vst.msk [vmem:[#allocation2 + $0x3a] sm:$0xf] %vm317_vm3, %v282_v58 }
  0x96   :  { %323 = vst.msk [vmem:[#allocation2 + $0x32] sm:$0xff] %vm315_vm2, %v280_v59 }
  0x99   :  { %v408_v60 = vpop.permute.xlu2 %407 }
  0x9a   :  { %431 = vst.msk [vmem:[#allocation2 + $0x10] sm:$0x1] %vm429_vm4, %v408_v60 }
  0x9c   :  { %v288_v61 = vpop.permute.xlu1 %287  ;;  %v286_v62 = vpop.permute.xlu0 %285 }
  0x9d   :  { %327 = vst.msk [vmem:[#allocation2 + $0x52] sm:$0xff] %vm315_vm2, %v288_v61 }
  0x9e   :  { %326 = vst.msk [vmem:[#allocation2 + $0x4a] sm:$0xf] %vm317_vm3, %v286_v62 }
  0xa1   :  { %v414_v63 = vpop.permute.xlu2 %413 }
  0xa2   :  { %434 = vst.msk [vmem:[#allocation2 + $0x40] sm:$0x1] %vm429_vm4, %v414_v63 }
  0xa4   :  { %v294_v0 = vpop.permute.xlu1 %293  ;;  %v292_v2 = vpop.permute.xlu0 %291 }
  0xa5   :  { %330 = vst.msk [vmem:[#allocation2 + $0x6a] sm:$0xf] %vm317_vm3, %v294_v0 }
  0xa6   :  { %329 = vst.msk [vmem:[#allocation2 + $0x62] sm:$0xff] %vm315_vm2, %v292_v2 }
  0xa9   :  { %v420_v4 = vpop.permute.xlu2 %419 }
  0xaa   :  { %437 = vst.msk [vmem:[#allocation2 + $0x70] sm:$0x1] %vm429_vm4, %v420_v4 }
  0xac   :  { %v406_v5 = vpop.permute.xlu1 %405  ;;  %v298_v1 = vpop.permute.xlu0 %297 }
  0xad   :  { %430 = vst.msk [vmem:[#allocation2] sm:$0x1] %vm429_vm4, %v406_v5 }
  0xae   :  { %332 = vst.msk [vmem:[#allocation2 + $0x7a] sm:$0xf] %vm317_vm3, %v298_v1 }
  0xb1   :  { %v539_v6 = vpop.permute.xlu2 %538 }
  0xb2   :  { %560 = vst.msk [vmem:[#allocation2 + $0x21] sm:$0x1] %vm429_vm4, %v539_v6 }
  0xb4   :  { %v412_v7 = vpop.permute.xlu1 %411  ;;  %v410_v8 = vpop.permute.xlu0 %409 }
  0xb5   :  { %433 = vst.msk [vmem:[#allocation2 + $0x30] sm:$0x1] %vm429_vm4, %v412_v7 }
  0xb6   :  { %432 = vst.msk [vmem:[#allocation2 + $0x20] sm:$0x1] %vm429_vm4, %v410_v8 }
  0xb9   :  { %v545_v3 = vpop.permute.xlu2 %544 }
  0xba   :  { %563 = vst.msk [vmem:[#allocation2 + $0x51] sm:$0x1] %vm429_vm4, %v545_v3 }
  0xbc   :  { %v418_v9 = vpop.permute.xlu1 %417  ;;  %v416_v10 = vpop.permute.xlu0 %415 }
  0xbd   :  { %436 = vst.msk [vmem:[#allocation2 + $0x60] sm:$0x1] %vm429_vm4, %v418_v9  ;;  %v1470_v39 = vld [vmem:[#allocation2 + $0x20] sm:$0xff] }
  0xbe   :  { %435 = vst.msk [vmem:[#allocation2 + $0x50] sm:$0x1] %vm429_vm4, %v416_v10 }
  0xc1   :  { %v663_v11 = vpop.permute.xlu2 %662 }
  0xc2   :  { %686 = vst.msk [vmem:[#allocation2 + $0xe] sm:$0x1] %vm429_vm4, %v663_v11 }
  0xc4   :  { %v537_v12 = vpop.permute.xlu1 %536  ;;  %v535_v13 = vpop.permute.xlu0 %534 }
  0xc5   :  { %559 = vst.msk [vmem:[#allocation2 + $0x11] sm:$0x1] %vm429_vm4, %v537_v12  ;;  %v1496_v46 = vld [vmem:[#allocation2 + $0x50] sm:$0xff] }
  0xc6   :  { %558 = vst.msk [vmem:[#allocation2 + $0x1] sm:$0x1] %vm429_vm4, %v535_v13 }
  0xc9   :  { %v669_v14 = vpop.permute.xlu2 %668 }
  0xca   :  { %689 = vst.msk [vmem:[#allocation2 + $0x3e] sm:$0x1] %vm429_vm4, %v669_v14 }
  0xcc   :  { %v543_v15 = vpop.permute.xlu1 %542  ;;  %v1430_v16 = vld [vmem:[#allocation2 + $0x10] sm:$0xff]  ;;  %v541_v18 = vpop.permute.xlu0 %540 }
  0xcd   :  { %562 = vst.msk [vmem:[#allocation2 + $0x41] sm:$0x1] %vm429_vm4, %v543_v15  ;;  %834 = vrot.lane.b32.xlu2 %v1430_v16, %s1268_s13  ;;  %v1435_v19 = vld [vmem:[#allocation2] sm:$0xff]  ;;  %v992_v51 = vmul.f32 0.4794383, %v1430_v16 }
  0xce   :  { %561 = vst.msk [vmem:[#allocation2 + $0x31] sm:$0x1] %vm429_vm4, %v541_v18  ;;  %830 = vrot.lane.b32.xlu0 %v1435_v19, %s1268_s13  ;;  %v990_v50 = vmul.f32 0.4794383, %v1435_v19 }
  0xd1   :  { %v675_v20 = vpop.permute.xlu2 %674 }
  0xd2   :  { %692 = vst.msk [vmem:[#allocation2 + $0x6e] sm:$0x1] %vm429_vm4, %v675_v20 }
  0xd4   :  { %v549_v21 = vpop.permute.xlu1 %548  ;;  %v547_v22 = vpop.permute.xlu0 %546  ;;  %v1486_v44 = vld [vmem:[#allocation2 + $0x40] sm:$0xff] }
  0xd5   :  { %565 = vst.msk [vmem:[#allocation2 + $0x71] sm:$0x1] %vm429_vm4, %v549_v21  ;;  %v1455_v34 = vld [vmem:[#allocation2 + $0x30] sm:$0xff] }
  0xd6   :  { %564 = vst.msk [vmem:[#allocation2 + $0x61] sm:$0x1] %vm429_vm4, %v547_v22 }
  0xd9   :  { %v769_v23 = vpop.permute.xlu2 %768 }
  0xda   :  { %791 = vst.msk [vmem:[#allocation2 + $0x1f] sm:$0x1] %vm429_vm4, %v769_v23 }
  0xdc   :  { %v667_v24 = vpop.permute.xlu1 %666  ;;  %v665_v25 = vpop.permute.xlu0 %664  ;;  %v1508_v49 = vld [vmem:[#allocation2 + $0x70] sm:$0xff] }
  0xdd   :  { %688 = vst.msk [vmem:[#allocation2 + $0x2e] sm:$0x1] %vm429_vm4, %v667_v24  ;;  %v1477_v42 = vld [vmem:[#allocation2 + $0x60] sm:$0xff] }
  0xde   :  { %687 = vst.msk [vmem:[#allocation2 + $0x1e] sm:$0x1] %vm429_vm4, %v665_v25 }
  0xe1   :  { %v775_v26 = vpop.permute.xlu2 %774 }
  0xe2   :  { %794 = vst.msk [vmem:[#allocation2 + $0x4f] sm:$0x1] %vm429_vm4, %v775_v26 }
  0xe4   :  { %v673_v27 = vpop.permute.xlu1 %672  ;;  %v671_v28 = vpop.permute.xlu0 %670 }
  0xe5   :  { %691 = vst.msk [vmem:[#allocation2 + $0x5e] sm:$0x1] %vm429_vm4, %v673_v27  ;;  %v1448_v29 = vld [vmem:[#allocation2 + $0x18] sm:$0xff] }
  0xe6   :  { %690 = vst.msk [vmem:[#allocation2 + $0x4e] sm:$0x1] %vm429_vm4, %v671_v28  ;;  %836 = vrot.lane.b32.xlu0 %v1448_v29, %s1268_s13 }
  0xe9   :  { %v781_v30 = vpop.permute.xlu2 %780 }
  0xea   :  { %797 = vst.msk [vmem:[#allocation2 + $0x7f] sm:$0x1] %vm429_vm4, %v781_v30 }
  0xec   :  { %v767_v31 = vpop.permute.xlu1 %766  ;;  %v677_v32 = vpop.permute.xlu0 %676 }
  0xed   :  { %790 = vst.msk [vmem:[#allocation2 + $0xf] sm:$0x1] %vm429_vm4, %v767_v31  ;;  %v1465_v38 = vld [vmem:[#allocation2 + $0x48] sm:$0xff] }
  0xee   :  { %693 = vst.msk [vmem:[#allocation2 + $0x7e] sm:$0x1] %vm429_vm4, %v677_v32  ;;  %842 = vrot.lane.b32.xlu0 %v1455_v34, %s1268_s13 }
  0xf4   :  { %v773_v35 = vpop.permute.xlu1 %772  ;;  %v1460_v36 = vld [vmem:[#allocation2 + $0x8] sm:$0xff]  ;;  %v771_v37 = vpop.permute.xlu0 %770 }
  0xf5   :  { %793 = vst.msk [vmem:[#allocation2 + $0x3f] sm:$0x1] %vm429_vm4, %v773_v35  ;;  %832 = vrot.lane.b32.xlu1 %v1460_v36, %s1268_s13  ;;  %v1490_v45 = vld [vmem:[#allocation2 + $0x78] sm:$0xff]  ;;  %v991_v52 = vmul.f32 0.4794383, %v1460_v36 }
  0xf6   :  { %792 = vst.msk [vmem:[#allocation2 + $0x2f] sm:$0x1] %vm429_vm4, %v771_v37  ;;  %848 = vrot.lane.b32.xlu0 %v1465_v38, %s1268_s13 }
  0xfc   :  { %v779_v33 = vpop.permute.xlu1 %778  ;;  %v777_v40 = vpop.permute.xlu0 %776  ;;  %v1484_v43 = vld [vmem:[#allocation2 + $0x38] sm:$0xff] }
  0xfd   :  { %796 = vst.msk [vmem:[#allocation2 + $0x6f] sm:$0x1] %vm429_vm4, %v779_v33  ;;  %v1473_v41 = vld [vmem:[#allocation2 + $0x28] sm:$0xff]  ;;  %838 = vrot.lane.b32.xlu1 %v1470_v39, %s1268_s13 }
  0xfe   :  { %795 = vst.msk [vmem:[#allocation2 + $0x5f] sm:$0x1] %vm429_vm4, %v777_v40  ;;  %840 = vrot.lane.b32.xlu2 %v1473_v41, %s1268_s13  ;;  %854 = vrot.lane.b32.xlu0 %v1477_v42, %s1268_s13 }
 0x104   :  { %v1506_v48 = vld [vmem:[#allocation2 + $0x68] sm:$0xff] }
 0x105   :  { %844 = vrot.lane.b32.xlu1 %v1484_v43, %s1268_s13  ;;  %v1498_v47 = vld [vmem:[#allocation2 + $0x58] sm:$0xff] }
 0x106   :  { %846 = vrot.lane.b32.xlu2 %v1486_v44, %s1268_s13  ;;  %860 = vrot.lane.b32.xlu0 %v1490_v45, %s1268_s13 }
 0x10d   :  { %850 = vrot.lane.b32.xlu1 %v1496_v46, %s1268_s13 }
 0x10e   :  { %852 = vrot.lane.b32.xlu2 %v1498_v47, %s1268_s13  ;;  %914 = vrot.lane.b32.xlu0 %v1430_v16, %s1269_s14 }
 0x115   :  { %856 = vrot.lane.b32.xlu1 %v1506_v48, %s1268_s13 }
 0x116   :  { %858 = vrot.lane.b32.xlu2 %v1508_v49, %s1268_s13  ;;  %920 = vrot.lane.b32.xlu0 %v1473_v41, %s1269_s14 }
 0x11d   :  { %910 = vrot.lane.b32.xlu1 %v1435_v19, %s1269_s14 }
 0x11e   :  { %912 = vrot.lane.b32.xlu2 %v1460_v36, %s1269_s14  ;;  %926 = vrot.lane.b32.xlu0 %v1486_v44, %s1269_s14 }
 0x125   :  { %916 = vrot.lane.b32.xlu1 %v1448_v29, %s1269_s14 }
 0x126   :  { %918 = vrot.lane.b32.xlu2 %v1470_v39, %s1269_s14  ;;  %932 = vrot.lane.b32.xlu0 %v1498_v47, %s1269_s14 }
 0x127   :  { %v1550_v53 = vpop.permute.xlu2 %834 }
 0x12d   :  { %922 = vrot.lane.b32.xlu1 %v1455_v34, %s1269_s14 }
 0x12e   :  { %924 = vrot.lane.b32.xlu2 %v1484_v43, %s1269_s14  ;;  %938 = vrot.lane.b32.xlu0 %v1508_v49, %s1269_s14 }
 0x135   :  { %928 = vrot.lane.b32.xlu1 %v1465_v38, %s1269_s14 }
 0x136   :  { %930 = vrot.lane.b32.xlu2 %v1496_v46, %s1269_s14  ;;  %1102 = vrot.lane.b32.xlu0 %v990_v50, %s1269_s14 }
 0x13d   :  { %934 = vrot.lane.b32.xlu1 %v1477_v42, %s1269_s14 }
 0x13e   :  { %936 = vrot.lane.b32.xlu2 %v1506_v48, %s1269_s14 }
 0x140   :  { %v1552_v54 = vpop.permute.xlu0 %830 }
 0x145   :  { %940 = vrot.lane.b32.xlu1 %v1490_v45, %s1269_s14 }
 0x146   :  { %1106 = vrot.lane.b32.xlu2 %v992_v51, %s1269_s14 }
 0x14d   :  { %1104 = vrot.lane.b32.xlu1 %v991_v52, %s1269_s14 }
 0x158   :  { %v1554_v17 = vpop.permute.xlu2 %840  ;;  %v1556_v55 = vpop.permute.xlu0 %836 }
 0x160   :  { %v1558_v56 = vpop.permute.xlu2 %846  ;;  %v1560_v57 = vpop.permute.xlu0 %842 }
 0x167   :  { %v1562_v58 = vpop.permute.xlu1 %832 }
 0x168   :  { %v1564_v59 = vpop.permute.xlu2 %852  ;;  %v1566_v60 = vpop.permute.xlu0 %848 }
 0x16f   :  { %v1568_v61 = vpop.permute.xlu1 %838 }
 0x170   :  { %v1570_v62 = vpop.permute.xlu2 %858  ;;  %v1572_v63 = vpop.permute.xlu0 %854 }
 0x177   :  { %v1574_v0 = vpop.permute.xlu1 %844 }
 0x178   :  { %v913_v2 = vpop.permute.xlu2 %912  ;;  %v1576_v4 = vpop.permute.xlu0 %860 }
 0x179   :  { %v959_v5 = vadd.f32 %v913_v2, %v1460_v36 }
 0x17b   :  { %v975_v1 = vmul.f32 0.23336768, %v959_v5 }
 0x17d   :  { %1024 = vrot.lane.b32.xlu0 %v975_v1, %s1270_s15 }
 0x17f   :  { %v1580_v6 = vpop.permute.xlu1 %850 }
 0x180   :  { %v919_v7 = vpop.permute.xlu2 %918  ;;  %v915_v8 = vpop.permute.xlu0 %914 }
 0x181   :  { %v962_v3 = vadd.f32 %v919_v7, %v1470_v39  ;;  %v960_v9 = vadd.f32 %v915_v8, %v1430_v16 }
 0x183   :  { %v978_v10 = vmul.f32 0.23336768, %v962_v3  ;;  %v976_v11 = vmul.f32 0.23336768, %v960_v9 }
 0x185   :  { %1026 = vrot.lane.b32.xlu1 %v976_v11, %s1270_s15  ;;  %1030 = vrot.lane.b32.xlu0 %v978_v10, %s1270_s15  ;;  %v993_v10 = vmul.f32 0.4794383, %v1448_v29 }
 0x187   :  { %v1586_v12 = vpop.permute.xlu1 %856 }
 0x188   :  { %v925_v13 = vpop.permute.xlu2 %924  ;;  %v921_v14 = vpop.permute.xlu0 %920 }
 0x189   :  { %v965_v15 = vadd.f32 %v925_v13, %v1484_v43  ;;  %v963_v18 = vadd.f32 %v921_v14, %v1473_v41 }
 0x18b   :  { %v981_v20 = vmul.f32 0.23336768, %v965_v15  ;;  %v979_v21 = vmul.f32 0.23336768, %v963_v18  ;;  %v994_v15 = vmul.f32 0.4794383, %v1470_v39 }
 0x18c   :  { %v996_v18 = vmul.f32 0.4794383, %v1455_v34 }
 0x18d   :  { %1032 = vrot.lane.b32.xlu1 %v979_v21, %s1270_s15  ;;  %1036 = vrot.lane.b32.xlu0 %v981_v20, %s1270_s15 }
 0x18f   :  { %v911_v22 = vpop.permute.xlu1 %910 }
 0x190   :  { %v931_v23 = vpop.permute.xlu2 %930  ;;  %v958_v24 = vadd.f32 %v911_v22, %v1435_v19  ;;  %v927_v25 = vpop.permute.xlu0 %926 }
 0x191   :  { %v968_v26 = vadd.f32 %v931_v23, %v1496_v46  ;;  %v966_v27 = vadd.f32 %v927_v25, %v1486_v44  ;;  %v997_v23 = vmul.f32 0.4794383, %v1484_v43 }
 0x192   :  { %v974_v28 = vmul.f32 0.23336768, %v958_v24  ;;  %v999_v24 = vmul.f32 0.4794383, %v1465_v38 }
 0x193   :  { %v984_v30 = vmul.f32 0.23336768, %v968_v26  ;;  %v982_v31 = vmul.f32 0.23336768, %v966_v27 }
 0x194   :  { %1022 = vrot.lane.b32.xlu2 %v974_v28, %s1270_s15  ;;  %v1000_v28 = vmul.f32 0.4794383, %v1496_v46 }
 0x195   :  { %1038 = vrot.lane.b32.xlu1 %v982_v31, %s1270_s15  ;;  %1042 = vrot.lane.b32.xlu0 %v984_v30, %s1270_s15  ;;  %v1002_v30 = vmul.f32 0.4794383, %v1477_v42  ;;  %v995_v31 = vmul.f32 0.4794383, %v1473_v41 }
 0x197   :  { %v917_v32 = vpop.permute.xlu1 %916 }
 0x198   :  { %v937_v35 = vpop.permute.xlu2 %936  ;;  %v961_v37 = vadd.f32 %v917_v32, %v1448_v29  ;;  %v933_v33 = vpop.permute.xlu0 %932  ;;  %v1003_v32 = vmul.f32 0.4794383, %v1506_v48 }
 0x199   :  { %v971_v40 = vadd.f32 %v937_v35, %v1506_v48  ;;  %v969_v50 = vadd.f32 %v933_v33, %v1498_v47  ;;  %v1005_v35 = vmul.f32 0.4794383, %v1490_v45  ;;  %v1001_v33 = vmul.f32 0.4794383, %v1498_v47 }
 0x19a   :  { %v977_v51 = vmul.f32 0.23336768, %v961_v37  ;;  %v998_v37 = vmul.f32 0.4794383, %v1486_v44 }
 0x19b   :  { %v987_v52 = vmul.f32 0.23336768, %v971_v40  ;;  %v985_v2 = vmul.f32 0.23336768, %v969_v50  ;;  %v1004_v40 = vmul.f32 0.4794383, %v1508_v49 }
 0x19c   :  { %1028 = vrot.lane.b32.xlu2 %v977_v51, %s1270_s15 }
 0x19d   :  { %1044 = vrot.lane.b32.xlu1 %v985_v2, %s1270_s15  ;;  %1048 = vrot.lane.b32.xlu0 %v987_v52, %s1270_s15  ;;  %v878_v52 = vadd.f32 %v1552_v54, %v1435_v19  ;;  %v879_v2 = vadd.f32 %v1562_v58, %v1460_v36 }
 0x19f   :  { %v923_v5 = vpop.permute.xlu1 %922 }
 0x1a0   :  { %v964_v1 = vadd.f32 %v923_v5, %v1455_v34  ;;  %v939_v7 = vpop.permute.xlu0 %938  ;;  %v1107_v50 = vpop.permute.xlu2 %1106  ;;  %v894_v5 = vmul.f32 0.026913157, %v878_v52 }
 0x1a1   :  { %v972_v8 = vadd.f32 %v939_v7, %v1508_v49 }
 0x1a2   :  { %v980_v3 = vmul.f32 0.23336768, %v964_v1  ;;  %v895_v1 = vmul.f32 0.026913157, %v879_v2 }
 0x1a3   :  { %v988_v9 = vmul.f32 0.23336768, %v972_v8 }
 0x1a4   :  { %1034 = vrot.lane.b32.xlu2 %v980_v3, %s1270_s15 }
 0x1a5   :  { %1050 = vrot.lane.b32.xlu1 %v988_v9, %s1270_s15  ;;  %1108 = vrot.lane.b32.xlu0 %v993_v10, %s1269_s14 }
 0x1a7   :  { %v929_v11 = vpop.permute.xlu1 %928 }
 0x1a8   :  { %v967_v13 = vadd.f32 %v929_v11, %v1465_v38  ;;  %v1103_v51 = vpop.permute.xlu0 %1102 }
 0x1aa   :  { %v983_v14 = vmul.f32 0.23336768, %v967_v13  ;;  %v880_v13 = vadd.f32 %v1550_v53, %v1430_v16 }
 0x1ac   :  { %1040 = vrot.lane.b32.xlu2 %v983_v14, %s1270_s15  ;;  %v896_v19 = vmul.f32 0.026913157, %v880_v13 }
 0x1ad   :  { %1110 = vrot.lane.b32.xlu1 %v994_v15, %s1269_s14  ;;  %1114 = vrot.lane.b32.xlu0 %v996_v18, %s1269_s14 }
 0x1af   :  { %v935_v20 = vpop.permute.xlu1 %934 }
 0x1b0   :  { %v970_v21 = vadd.f32 %v935_v20, %v1477_v42 }
 0x1b2   :  { %v986_v22 = vmul.f32 0.23336768, %v970_v21 }
 0x1b4   :  { %1046 = vrot.lane.b32.xlu2 %v986_v22, %s1270_s15 }
 0x1b5   :  { %1116 = vrot.lane.b32.xlu1 %v997_v23, %s1269_s14  ;;  %1120 = vrot.lane.b32.xlu0 %v999_v24, %s1269_s14 }
 0x1b7   :  { %v941_v25 = vpop.permute.xlu1 %940 }
 0x1b8   :  { %v973_v26 = vadd.f32 %v941_v25, %v1490_v45 }
 0x1ba   :  { %v989_v27 = vmul.f32 0.23336768, %v973_v26 }
 0x1bc   :  { %1052 = vrot.lane.b32.xlu2 %v989_v27, %s1270_s15  ;;  %v881_v27 = vadd.f32 %v1556_v55, %v1448_v29 }
 0x1bd   :  { %1122 = vrot.lane.b32.xlu1 %v1000_v28, %s1269_s14  ;;  %1126 = vrot.lane.b32.xlu0 %v1002_v30, %s1269_s14 }
 0x1be   :  { %v897_v28 = vmul.f32 0.026913157, %v881_v27 }
 0x1bf   :  { %v1105_v8 = vpop.permute.xlu1 %1104 }
 0x1c4   :  { %1112 = vrot.lane.b32.xlu2 %v995_v31, %s1269_s14 }
 0x1c5   :  { %1128 = vrot.lane.b32.xlu1 %v1003_v32, %s1269_s14  ;;  %1132 = vrot.lane.b32.xlu0 %v1005_v35, %s1269_s14  ;;  %v883_v32 = vadd.f32 %v1554_v17, %v1473_v41  ;;  %v886_v41 = vadd.f32 %v1558_v56, %v1486_v44 }
 0x1c7   :  { %v899_v29 = vmul.f32 0.026913157, %v883_v32 }
 0x1cc   :  { %1118 = vrot.lane.b32.xlu2 %v998_v37, %s1269_s14 }
 0x1d4   :  { %1124 = vrot.lane.b32.xlu2 %v1001_v33, %s1269_s14  ;;  %v884_v33 = vadd.f32 %v1560_v57, %v1455_v34  ;;  %v887_v34 = vadd.f32 %v1566_v60, %v1465_v38  ;;  %v889_v38 = vadd.f32 %v1564_v59, %v1498_v47 }
 0x1d6   :  { %v900_v55 = vmul.f32 0.026913157, %v884_v33 }
 0x1dc   :  { %1130 = vrot.lane.b32.xlu2 %v1004_v40, %s1269_s14  ;;  %v882_v40 = vadd.f32 %v1568_v61, %v1470_v39  ;;  %v885_v39 = vadd.f32 %v1574_v0, %v1484_v43 }
 0x1de   :  { %v901_v44 = vmul.f32 0.026913157, %v885_v39 }
 0x1ee   :  { %v1023_v7 = vpop.permute.xlu2 %1022 }
 0x1ef   :  { %v1070_v3 = vadd.f32 %v1023_v7, %v894_v5  ;;  %v1025_v9 = vpop.permute.xlu0 %1024 }
 0x1f0   :  { %v1071_v10 = vadd.f32 %v1025_v9, %v895_v1  ;;  %v903_v9 = vmul.f32 0.026913157, %v887_v34 }
 0x1f1   :  { %v1150_v11 = vadd.f32 %v1103_v51, %v1070_v3  ;;  %v898_v51 = vmul.f32 0.026913157, %v882_v40  ;;  %v902_v3 = vmul.f32 0.026913157, %v886_v41 }
 0x1f2   :  { %v1151_v14 = vadd.f32 %v1105_v8, %v1071_v10 }
 0x1f3   :  { %1167 = vst.msk [vmem:[#allocation6] sm:$0xff] %vm1166_vm5, %v1150_v11 }
 0x1f4   :  { %1168 = vst.msk [vmem:[#allocation6 + $0x8] sm:$0xff] %vm1166_vm5, %v1151_v14  ;;  %v890_v14 = vadd.f32 %v1572_v63, %v1477_v42  ;;  %v892_v42 = vadd.f32 %v1570_v62, %v1508_v49 }
 0x1f6   :  { %v1029_v54 = vpop.permute.xlu2 %1028 }
 0x1f7   :  { %v1027_v36 = vpop.permute.xlu1 %1026  ;;  %v1031_v58 = vpop.permute.xlu0 %1030  ;;  %v1073_v30 = vadd.f32 %v1029_v54, %v897_v28 }
 0x1f8   :  { %v1072_v15 = vadd.f32 %v1027_v36, %v896_v19  ;;  %v1074_v2 = vadd.f32 %v1031_v58, %v898_v51  ;;  %v888_v19 = vadd.f32 %v1580_v6, %v1496_v46  ;;  %v905_v58 = vmul.f32 0.026913157, %v889_v38 }
 0x1fa   :  { %v1152_v18 = vadd.f32 %v1107_v50, %v1072_v15  ;;  %v906_v15 = vmul.f32 0.026913157, %v890_v14  ;;  %v904_v47 = vmul.f32 0.026913157, %v888_v19 }
 0x1fc   :  { %1169 = vst.msk [vmem:[#allocation6 + $0x10] sm:$0xff] %vm1166_vm5, %v1152_v18 }
 0x1fe   :  { %v1035_v20 = vpop.permute.xlu2 %1034 }
 0x1ff   :  { %v1033_v21 = vpop.permute.xlu1 %1032  ;;  %v1037_v22 = vpop.permute.xlu0 %1036  ;;  %v1076_v5 = vadd.f32 %v1035_v20, %v900_v55 }
 0x200   :  { %v1075_v52 = vadd.f32 %v1033_v21, %v899_v29  ;;  %v1077_v10 = vadd.f32 %v1037_v22, %v901_v44  ;;  %v893_v22 = vadd.f32 %v1576_v4, %v1490_v45 }
 0x206   :  { %v1041_v23 = vpop.permute.xlu2 %1040 }
 0x207   :  { %v1039_v24 = vpop.permute.xlu1 %1038  ;;  %v1043_v25 = vpop.permute.xlu0 %1042  ;;  %v1079_v11 = vadd.f32 %v1041_v23, %v903_v9  ;;  %v891_v23 = vadd.f32 %v1586_v12, %v1506_v48 }
 0x208   :  { %v1078_v56 = vadd.f32 %v1039_v24, %v902_v3  ;;  %v1080_v18 = vadd.f32 %v1043_v25, %v904_v47  ;;  %v908_v25 = vmul.f32 0.026913157, %v892_v42 }
 0x209   :  { %v907_v49 = vmul.f32 0.026913157, %v891_v23 }
 0x20e   :  { %v1047_v16 = vpop.permute.xlu2 %1046 }
 0x20f   :  { %v1045_v53 = vpop.permute.xlu1 %1044  ;;  %v1649_v26 = vpop.permute.xlu0 %1048  ;;  %v1082_v20 = vadd.f32 %v1047_v16, %v906_v15  ;;  %v909_v16 = vmul.f32 0.026913157, %v893_v22 }
 0x210   :  { %v1081_v59 = vadd.f32 %v1045_v53, %v905_v58  ;;  %v1083_v53 = vadd.f32 %v1649_v26, %v907_v49 }
 0x216   :  { %v1653_v31 = vpop.permute.xlu2 %1052 }
 0x217   :  { %v1657_v35 = vpop.permute.xlu1 %1050  ;;  %v1109_v37 = vpop.permute.xlu0 %1108  ;;  %v1085_v45 = vadd.f32 %v1653_v31, %v909_v16 }
 0x218   :  { %v1153_v50 = vadd.f32 %v1109_v37, %v1073_v30  ;;  %v1084_v62 = vadd.f32 %v1657_v35, %v908_v25 }
 0x21a   :  { %1170 = vst.msk [vmem:[#allocation6 + $0x18] sm:$0xff] %vm1166_vm5, %v1153_v50 }
 0x21e   :  { %v1113_v1 = vpop.permute.xlu2 %1112 }
 0x21f   :  { %v1155_v17 = vadd.f32 %v1113_v1, %v1075_v52  ;;  %v1111_v7 = vpop.permute.xlu1 %1110  ;;  %v1115_v8 = vpop.permute.xlu0 %1114 }
 0x220   :  { %v1154_v57 = vadd.f32 %v1111_v7, %v1074_v2  ;;  %v1156_v61 = vadd.f32 %v1115_v8, %v1076_v5 }
 0x221   :  { %1172 = vst.msk [vmem:[#allocation6 + $0x28] sm:$0xff] %vm1166_vm5, %v1155_v17 }
 0x222   :  { %1171 = vst.msk [vmem:[#allocation6 + $0x20] sm:$0xff] %vm1166_vm5, %v1154_v57 }
 0x223   :  { %1173 = vst.msk [vmem:[#allocation6 + $0x30] sm:$0xff] %vm1166_vm5, %v1156_v61 }
 0x226   :  { %v1119_v13 = vpop.permute.xlu2 %1118 }
 0x227   :  { %v1158_v60 = vadd.f32 %v1119_v13, %v1078_v56  ;;  %v1117_v43 = vpop.permute.xlu1 %1116  ;;  %v1121_v0 = vpop.permute.xlu0 %1120 }
 0x228   :  { %v1157_v54 = vadd.f32 %v1117_v43, %v1077_v10  ;;  %v1159_v36 = vadd.f32 %v1121_v0, %v1079_v11 }
 0x229   :  { %1175 = vst.msk [vmem:[#allocation6 + $0x40] sm:$0xff] %vm1166_vm5, %v1158_v60 }
 0x22a   :  { %1174 = vst.msk [vmem:[#allocation6 + $0x38] sm:$0xff] %vm1166_vm5, %v1157_v54 }
 0x22b   :  { %1176 = vst.msk [vmem:[#allocation6 + $0x48] sm:$0xff] %vm1166_vm5, %v1159_v36 }
 0x22e   :  { %v1125_v21 = vpop.permute.xlu2 %1124 }
 0x22f   :  { %v1161_v63 = vadd.f32 %v1125_v21, %v1081_v59  ;;  %v1123_v46 = vpop.permute.xlu1 %1122  ;;  %v1127_v6 = vpop.permute.xlu0 %1126 }
 0x230   :  { %v1160_v24 = vadd.f32 %v1123_v46, %v1080_v18  ;;  %v1162_v27 = vadd.f32 %v1127_v6, %v1082_v20 }
 0x231   :  { %1178 = vst.msk [vmem:[#allocation6 + $0x58] sm:$0xff] %vm1166_vm5, %v1161_v63 }
 0x232   :  { %1177 = vst.msk [vmem:[#allocation6 + $0x50] sm:$0xff] %vm1166_vm5, %v1160_v24 }
 0x233   :  { %1179 = vst.msk [vmem:[#allocation6 + $0x60] sm:$0xff] %vm1166_vm5, %v1162_v27 }
 0x236   :  { %v1131_v4 = vpop.permute.xlu2 %1130 }
 0x237   :  { %v1164_v48 = vadd.f32 %v1131_v4, %v1084_v62  ;;  %v1129_v12 = vpop.permute.xlu1 %1128  ;;  %v1133_v28 = vpop.permute.xlu0 %1132 }
 0x238   :  { %v1163_v30 = vadd.f32 %v1129_v12, %v1083_v53  ;;  %v1165_v32 = vadd.f32 %v1133_v28, %v1085_v45 }
 0x239   :  { %1181 = vst.msk [vmem:[#allocation6 + $0x70] sm:$0xff] %vm1166_vm5, %v1164_v48 }
 0x23a   :  { %1180 = vst.msk [vmem:[#allocation6 + $0x68] sm:$0xff] %vm1166_vm5, %v1163_v30 }
 0x23b   :  { %1182 = vst.msk [vmem:[#allocation6 + $0x78] sm:$0xff] %vm1166_vm5, %v1165_v32 }
 0x23c   :  { %1195 = dma.vmem_to_hbm [thread:$0]  %s1188_s17, 2048, %s1190_s20, [#allocation5], %s1264_s11, %s1264_s11, %s1265_s12  }
 0x23d   :  { %1261 = dma.done.wait [#allocation5], 2048  }
 0x23e   :  { %1262 = vsyncadd [#allocation5], 4294965248 }
 0x23f   :  { %1200 = vsyncpa [#allocation4], 1 }
 0x240   :  { %1201 = vsyncpa [#allocation5], 1 }

</bundles_post_ra>
